<compile_context>
chip_gen: v5e
topology: v5e:2x2
jax: 0.10.0
libtpu: 0.0.40
codegen_flags: <defaults>
</compile_context>

<pallas_src>
import math
import functools

import jax
import jax.numpy as jnp
from jax.experimental import pallas as pl
from jax.experimental.pallas import tpu as pltpu

LN_EPS = 1e-5


# --------------------------------------------------------------------------
# Fused decoder kernel: all layers + final mask einsum for one batch element.
# --------------------------------------------------------------------------
def _decoder_kernel(num_heads, num_cls,
                    x_ref, g1_ref, b1_ref, wqkv_ref, bqkv_ref, wo_ref, bo_ref,
                    g2_ref, b2_ref, w1_ref, bb1_ref, w2_ref, bb2_ref,
                    o_ref, x_scr):
    l = pl.program_id(1)

    @pl.when(l == 0)
    def _():
        x_scr[...] = x_ref[0].astype(jnp.float32)

    x = x_scr[...]                                    # (N, D) f32, carried over l
    N, D = x.shape
    dh = D // num_heads
    scale = 1.0 / math.sqrt(dh)

    # ---- LayerNorm 1 + fused QKV projection (bf16 MXU, f32 accumulate) ----
    mu = jnp.mean(x, axis=-1, keepdims=True)
    var = jnp.mean((x - mu) ** 2, axis=-1, keepdims=True)
    xn = (x - mu) * jax.lax.rsqrt(var + LN_EPS) * g1_ref[0, 0] + b1_ref[0, 0]

    qkv = jnp.dot(xn.astype(jnp.bfloat16), wqkv_ref[0],
                  preferred_element_type=jnp.float32) + bqkv_ref[0, 0]
    q, k, v = qkv[:, :D], qkv[:, D:2 * D], qkv[:, 2 * D:]

    wo = wo_ref[0]                                    # (D, D) bf16, loaded once
    attn = jnp.zeros((N, D), jnp.float32)
    for h in range(num_heads):                        # small static unroll
        sl = slice(h * dh, (h + 1) * dh)
        qh = q[:, sl].astype(jnp.bfloat16)
        kh = k[:, sl].astype(jnp.bfloat16)
        vh = v[:, sl].astype(jnp.bfloat16)
        # scores: contract dh of q against dh of k (no materialised transpose)
        s = jax.lax.dot_general(qh, kh, (((1,), (1,)), ((), ())),
                                preferred_element_type=jnp.float32) * scale
        s = s - jnp.max(s, axis=-1, keepdims=True)
        p = jnp.exp(s)
        p = p * pl.reciprocal(jnp.sum(p, axis=-1, keepdims=True), approx=True)
        hv = jnp.dot(p.astype(jnp.bfloat16), vh,
                     preferred_element_type=jnp.float32)
        # accumulate straight through the output projection (no head concat)
        attn = attn + jnp.dot(hv.astype(jnp.bfloat16), wo[sl, :],
                              preferred_element_type=jnp.float32)
    x = x + attn + bo_ref[0, 0]

    # ---- LayerNorm 2 + MLP ----
    mu2 = jnp.mean(x, axis=-1, keepdims=True)
    var2 = jnp.mean((x - mu2) ** 2, axis=-1, keepdims=True)
    xn2 = (x - mu2) * jax.lax.rsqrt(var2 + LN_EPS) * g2_ref[0, 0] + b2_ref[0, 0]

    h1 = jnp.dot(xn2.astype(jnp.bfloat16), w1_ref[0],
                 preferred_element_type=jnp.float32) + bb1_ref[0, 0]
    h1 = jax.nn.gelu(h1, approximate=True)            # f32 vector math
    h2 = jnp.dot(h1.astype(jnp.bfloat16), w2_ref[0],
                 preferred_element_type=jnp.float32) + bb2_ref[0, 0]
    x = x + h2
    x_scr[...] = x

    # ---- after the last layer: fused, lane-dense mask einsum ----
    @pl.when(l == pl.num_programs(1) - 1)
    def _():
        cls_t = x[:num_cls, :].astype(jnp.bfloat16)       # (K, D)
        patch = x[num_cls:, :].astype(jnp.bfloat16)       # (Np, D)
        masks = jax.lax.dot_general(cls_t, patch, (((1,), (1,)), ((), ())),
                                    preferred_element_type=jnp.float32)
        o_ref[0] = masks.astype(o_ref.dtype)              # (K, Np): lane axis = Np


# --------------------------------------------------------------------------
# Wrapper
# --------------------------------------------------------------------------
def _vmem_limit_bytes(N, D, F, K, Np):
    bf16, f32 = 2, 4
    w_layer = (D * 3 * D + D * D + D * F + F * D) * bf16          # bf16 weights
    p_layer = (3 * D + 6 * D + F) * f32                           # LN params + biases
    io = (N * D + K * Np) * f32                                   # x block + mask block
    scratch = N * D * f32
    temps = (N * 3 * D + 3 * N * N + N * F + 4 * N * D) * f32     # qkv/scores/h1/misc
    total = 2 * (w_layer + p_layer + io) + scratch + temps + (2 << 20)
    return int(min(max(total, 8 << 20), 64 << 20))


def mask_transformer_forward(x, params):
    """x: (B, Np, d_model) -> (B, size, size, num_classes)."""
    B, Np, D = x.shape
    K = params["cls_tokens"].shape[1]
    L, _, F = params["w1"].shape
    N = K + Np

    cls = jnp.broadcast_to(params["cls_tokens"], (B, K, D)).astype(x.dtype)
    tokens = jnp.concatenate([cls, x], axis=1)            # (B, N, D) XLA glue

    def layer_spec(arr):                                  # per-layer stacked weight
        shp = (1,) + arr.shape[1:]
        return pl.BlockSpec(shp, lambda b, l: (l, 0, 0))

    weight_names = ("g1", "b1", "wqkv", "bqkv", "wo", "bo",
                    "g2", "b2", "w1", "bb1", "w2", "bb2")
    in_specs = [pl.BlockSpec((1, N, D), lambda b, l: (b, 0, 0))]
    in_specs += [layer_spec(params[n]) for n in weight_names]

    masks = pl.pallas_call(
        functools.partial(_decoder_kernel, params["num_heads"], K),
        out_shape=jax.ShapeDtypeStruct((B, K, Np), jnp.float32),
        grid=(B, L),
        in_specs=in_specs,
        out_specs=pl.BlockSpec((1, K, Np), lambda b, l: (b, 0, 0)),
        scratch_shapes=[pltpu.VMEM((N, D), jnp.float32)],
        compiler_params=pltpu.CompilerParams(
            dimension_semantics=("parallel", "arbitrary"),
            vmem_limit_bytes=_vmem_limit_bytes(N, D, F, K, Np)),
    )(tokens, *[params[n] for n in weight_names])

    size = int(math.sqrt(Np))
    # lane-dense (B, K, Np) -> (B, Np, K) -> (B, size, size, K)  (cheap XLA glue)
    return masks.transpose(0, 2, 1).reshape(B, size, size, K)


# --------------------------------------------------------------------------
# Pure-JAX reference (bf16-MXU-matched) for correctness check
# --------------------------------------------------------------------------
def _ref_forward(x, params):
    B, Np, D = x.shape
    K = params["cls_tokens"].shape[1]
    H = params["num_heads"]
    L = params["wqkv"].shape[0]
    dh = D // H

    cls = jnp.broadcast_to(params["cls_tokens"], (B, K, D)).astype(jnp.float32)
    t = jnp.concatenate([cls, x.astype(jnp.float32)], axis=1)

    def ln(z, g, b):
        mu = jnp.mean(z, -1, keepdims=True)
        var = jnp.mean((z - mu) ** 2, -1, keepdims=True)
        return (z - mu) * jax.lax.rsqrt(var + LN_EPS) * g + b

    def mm(a, w):   # bf16-input matmul with f32 accumulation (matches kernel)
        return jax.lax.dot_general(
            a.astype(jnp.bfloat16), w.astype(jnp.bfloat16),
            (((a.ndim - 1,), (0,)), ((), ())),
            preferred_element_type=jnp.float32)

    for l in range(L):
        xn = ln(t, params["g1"][l, 0], params["b1"][l, 0])
        qkv = mm(xn, params["wqkv"][l]) + params["bqkv"][l, 0]
        q, k, v = qkv[..., :D], qkv[..., D:2 * D], qkv[..., 2 * D:]
        q = q.reshape(B, -1, H, dh).transpose(0, 2, 1, 3)
        k = k.reshape(B, -1, H, dh).transpose(0, 2, 1, 3)
        v = v.reshape(B, -1, H, dh).transpose(0, 2, 1, 3)
        s = jnp.einsum("bhnd,bhmd->bhnm",
                       q.astype(jnp.bfloat16), k.astype(jnp.bfloat16),
                       preferred_element_type=jnp.float32) / math.sqrt(dh)
        p = jax.nn.softmax(s, axis=-1)
        o = jnp.einsum("bhnm,bhmd->bhnd",
                       p.astype(jnp.bfloat16), v.astype(jnp.bfloat16),
                       preferred_element_type=jnp.float32)
        o = o.transpose(0, 2, 1, 3).reshape(B, -1, D)
        t = t + mm(o, params["wo"][l]) + params["bo"][l, 0]
        xn2 = ln(t, params["g2"][l, 0], params["b2"][l, 0])
        h1 = jax.nn.gelu(mm(xn2, params["w1"][l]) + params["bb1"][l, 0],
                         approximate=True)
        t = t + mm(h1, params["w2"][l]) + params["bb2"][l, 0]

    out_cls, out_patch = t[:, :K], t[:, K:]
    masks = jnp.einsum("bnd,bkd->bnk",
                       out_patch.astype(jnp.bfloat16), out_cls.astype(jnp.bfloat16),
                       preferred_element_type=jnp.float32)
    size = int(math.sqrt(masks.shape[1]))
    return masks.reshape(B, size, size, -1)


# --------------------------------------------------------------------------
# Deterministic parameter init (stacked per-layer tensors; weights in bf16)
# --------------------------------------------------------------------------
def init_params(key, num_classes, d_model, d_ff, num_layers, num_heads):
    assert d_model % num_heads == 0
    k_cls, k_layers = jax.random.split(key)
    lkeys = jax.random.split(k_layers, num_layers)
    s = 0.02

    def wstack(idx, shape):
        return jnp.stack([
            s * jax.random.normal(jax.random.fold_in(lkeys[l], idx), shape,
                                  jnp.float32)
            for l in range(num_layers)]).astype(jnp.bfloat16)

    def bstack(idx, dim):
        return jnp.stack([
            0.01 * jax.random.normal(jax.random.fold_in(lkeys[l], 100 + idx),
                                     (1, dim), jnp.float32)
            for l in range(num_layers)])

    ones = jnp.ones((num_layers, 1, d_model), jnp.float32)
    zeros = jnp.zeros((num_layers, 1, d_model), jnp.float32)

    return {
        "num_heads": num_heads,
        "cls_tokens": jax.random.normal(k_cls, (1, num_classes, d_model),
                                        jnp.float32),
        "g1": ones, "b1": zeros,
        "wqkv": wstack(0, (d_model, 3 * d_model)), "bqkv": bstack(0, 3 * d_model),
        "wo": wstack(1, (d_model, d_model)), "bo": bstack(1, d_model),
        "g2": ones, "b2": zeros,
        "w1": wstack(2, (d_model, d_ff)), "bb1": bstack(2, d_ff),
        "w2": wstack(3, (d_ff, d_model)), "bb2": bstack(3, d_model),
    }


# --------------------------------------------------------------------------
if __name__ == "__main__":
    # Small config: B=2, num_classes=4, d_model=32, d_ff=64, 2 layers, 2 heads,
    # 16 patches (4x4 spatial grid so sqrt() is integral).
    B, num_classes, d_model, d_ff, num_layers, num_heads = 2, 4, 32, 64, 2, 2
    n_patch = 16

    key = jax.random.PRNGKey(0)
    k_param, k_x = jax.random.split(key)
    params = init_params(k_param, num_classes, d_model, d_ff, num_layers,
                         num_heads)
    x = jax.random.normal(k_x, (B, n_patch, d_model), jnp.float32)

    out = jax.block_until_ready(mask_transformer_forward(x, params))
    ref = _ref_forward(x, params)

    assert out.shape == (B, 4, 4, num_classes), out.shape
    max_err = float(jnp.max(jnp.abs(out - ref)))
    assert jnp.allclose(out, ref, atol=2e-2, rtol=2e-2), max_err

    print("KERNEL_OK")
</pallas_src>

<mosaic_0001>
module attributes {stable_mosaic.version = 11 : i64} {
  func.func @_decoder_kernel(%arg0: i32, %arg1: i32, %arg2: memref<1x20x32xf32, #tpu.memory_space<vmem>>, %arg3: memref<1x1x32xf32, #tpu.memory_space<vmem>>, %arg4: memref<1x1x32xf32, #tpu.memory_space<vmem>>, %arg5: memref<1x32x96xbf16, #tpu.memory_space<vmem>>, %arg6: memref<1x1x96xf32, #tpu.memory_space<vmem>>, %arg7: memref<1x32x32xbf16, #tpu.memory_space<vmem>>, %arg8: memref<1x1x32xf32, #tpu.memory_space<vmem>>, %arg9: memref<1x1x32xf32, #tpu.memory_space<vmem>>, %arg10: memref<1x1x32xf32, #tpu.memory_space<vmem>>, %arg11: memref<1x32x64xbf16, #tpu.memory_space<vmem>>, %arg12: memref<1x1x64xf32, #tpu.memory_space<vmem>>, %arg13: memref<1x64x32xbf16, #tpu.memory_space<vmem>>, %arg14: memref<1x1x32xf32, #tpu.memory_space<vmem>>, %arg15: memref<1x4x16xf32, #tpu.memory_space<vmem>>, %arg16: memref<20x32xf32, #tpu.memory_space<vmem>>) attributes {dimension_semantics = [#tpu.dimension_semantics<parallel>, #tpu.dimension_semantics<arbitrary>], iteration_bounds = array<i64: 2, 2>, scalar_prefetch = 0 : i64, scratch_operands = 1 : i64, tpu.core_type = #tpu.core_type<tc>, window_params = [{transform_indices = @transform_0, window_bounds = array<i64: 1, 20, 32>}, {transform_indices = @transform_1, window_bounds = array<i64: 1, 1, 32>}, {transform_indices = @transform_2, window_bounds = array<i64: 1, 1, 32>}, {transform_indices = @transform_3, window_bounds = array<i64: 1, 32, 96>}, {transform_indices = @transform_4, window_bounds = array<i64: 1, 1, 96>}, {transform_indices = @transform_5, window_bounds = array<i64: 1, 32, 32>}, {transform_indices = @transform_6, window_bounds = array<i64: 1, 1, 32>}, {transform_indices = @transform_7, window_bounds = array<i64: 1, 1, 32>}, {transform_indices = @transform_8, window_bounds = array<i64: 1, 1, 32>}, {transform_indices = @transform_9, window_bounds = array<i64: 1, 32, 64>}, {transform_indices = @transform_10, window_bounds = array<i64: 1, 1, 64>}, {transform_indices = @transform_11, window_bounds = array<i64: 1, 64, 32>}, {transform_indices = @transform_12, window_bounds = array<i64: 1, 1, 32>}, {transform_indices = @transform_13, window_bounds = array<i64: 1, 4, 16>}]} {
    %c0_i32 = arith.constant 0 : i32
    %0 = arith.cmpi eq, %arg1, %c0_i32 : i32
    %1 = arith.extui %0 : i1 to i32
    %c0_i32_0 = arith.constant 0 : i32
    %2 = arith.cmpi ne, %1, %c0_i32_0 : i32
    scf.if %2 {
      %c0_70 = arith.constant 0 : index
      %c0_71 = arith.constant 0 : index
      %c0_72 = arith.constant 0 : index
      %167 = vector.load %arg2[%c0_70, %c0_71, %c0_72] : memref<1x20x32xf32, #tpu.memory_space<vmem>>, vector<1x20x32xf32>
      %168 = vector.shape_cast %167 : vector<1x20x32xf32> to vector<20x32xf32>
      %c0_73 = arith.constant 0 : index
      %c0_74 = arith.constant 0 : index
      %169 = vector.load %arg16[%c0_73, %c0_74] : memref<20x32xf32, #tpu.memory_space<vmem>>, vector<20x32xf32>
      tpu.vector_store %arg16[%c0_73, %c0_74], %168 {strides = array<i32>} : memref<20x32xf32, #tpu.memory_space<vmem>>, vector<20x32xf32>,
    } else {
    }
    %c0 = arith.constant 0 : index
    %c0_1 = arith.constant 0 : index
    %3 = vector.load %arg16[%c0, %c0_1] : memref<20x32xf32, #tpu.memory_space<vmem>>, vector<20x32xf32>
    %cst = arith.constant dense<0.000000e+00> : vector<20xf32>
    %4 = vector.multi_reduction <add>, %3, %cst [1] : vector<20x32xf32> to vector<20xf32>
    %5 = vector.shape_cast %4 : vector<20xf32> to vector<20x1xf32>
    %cst_2 = arith.constant 3.200000e+01 : f32
    %6 = vector.broadcast %cst_2 : f32 to vector<20x1xf32>
    %7 = arith.divf %5, %6 : vector<20x1xf32>
    %8 = vector.broadcast %7 : vector<20x1xf32> to vector<20x32xf32>
    %9 = arith.subf %3, %8 : vector<20x32xf32>
    %10 = arith.mulf %9, %9 : vector<20x32xf32>
    %cst_3 = arith.constant dense<0.000000e+00> : vector<20xf32>
    %11 = vector.multi_reduction <add>, %10, %cst_3 [1] : vector<20x32xf32> to vector<20xf32>
    %12 = vector.shape_cast %11 : vector<20xf32> to vector<20x1xf32>
    %cst_4 = arith.constant 3.200000e+01 : f32
    %13 = vector.broadcast %cst_4 : f32 to vector<20x1xf32>
    %14 = arith.divf %12, %13 : vector<20x1xf32>
    %15 = vector.broadcast %7 : vector<20x1xf32> to vector<20x32xf32>
    %16 = arith.subf %3, %15 : vector<20x32xf32>
    %cst_5 = arith.constant 9.99999974E-6 : f32
    %17 = vector.broadcast %cst_5 : f32 to vector<20x1xf32>
    %18 = arith.addf %14, %17 : vector<20x1xf32>
    %19 = math.rsqrt %18 : vector<20x1xf32>
    %20 = vector.broadcast %19 : vector<20x1xf32> to vector<20x32xf32>
    %21 = arith.mulf %16, %20 : vector<20x32xf32>
    %c0_6 = arith.constant 0 : index
    %c0_7 = arith.constant 0 : index
    %c0_8 = arith.constant 0 : index
    %22 = vector.load %arg3[%c0_6, %c0_7, %c0_8] : memref<1x1x32xf32, #tpu.memory_space<vmem>>, vector<1x1x32xf32>
    %23 = vector.shape_cast %22 : vector<1x1x32xf32> to vector<32xf32>
    %24 = vector.shape_cast %23 : vector<32xf32> to vector<1x32xf32>
    %25 = vector.broadcast %24 : vector<1x32xf32> to vector<20x32xf32>
    %26 = arith.mulf %21, %25 : vector<20x32xf32>
    %c0_9 = arith.constant 0 : index
    %c0_10 = arith.constant 0 : index
    %c0_11 = arith.constant 0 : index
    %27 = vector.load %arg4[%c0_9, %c0_10, %c0_11] : memref<1x1x32xf32, #tpu.memory_space<vmem>>, vector<1x1x32xf32>
    %28 = vector.shape_cast %27 : vector<1x1x32xf32> to vector<32xf32>
    %29 = vector.shape_cast %28 : vector<32xf32> to vector<1x32xf32>
    %30 = vector.broadcast %29 : vector<1x32xf32> to vector<20x32xf32>
    %31 = arith.addf %26, %30 : vector<20x32xf32>
    %32 = arith.truncf %31 : vector<20x32xf32> to vector<20x32xbf16>
    %c0_12 = arith.constant 0 : index
    %c0_13 = arith.constant 0 : index
    %c0_14 = arith.constant 0 : index
    %33 = vector.load %arg5[%c0_12, %c0_13, %c0_14] : memref<1x32x96xbf16, #tpu.memory_space<vmem>>, vector<1x32x96xbf16>
    %34 = vector.shape_cast %33 : vector<1x32x96xbf16> to vector<32x96xbf16>
    %cst_15 = arith.constant dense<0.000000e+00> : vector<20x96xf32>
    %35 = tpu.matmul %32, %34, %cst_15 {dimension_numbers = #tpu.dot_dimension_numbers<[1], [0], [0], [1], [0, 0, 1, 1], [], []>} : vector<20x32xbf16>, vector<32x96xbf16>, vector<20x96xf32> -> vector<20x96xf32>
    %c0_16 = arith.constant 0 : index
    %c0_17 = arith.constant 0 : index
    %c0_18 = arith.constant 0 : index
    %36 = vector.load %arg6[%c0_16, %c0_17, %c0_18] : memref<1x1x96xf32, #tpu.memory_space<vmem>>, vector<1x1x96xf32>
    %37 = vector.shape_cast %36 : vector<1x1x96xf32> to vector<96xf32>
    %38 = vector.shape_cast %37 : vector<96xf32> to vector<1x96xf32>
    %39 = vector.broadcast %38 : vector<1x96xf32> to vector<20x96xf32>
    %40 = arith.addf %35, %39 : vector<20x96xf32>
    %41 = vector.extract_strided_slice %40 {offsets = [0, 0], sizes = [20, 32], strides = [1, 1]} : vector<20x96xf32> to vector<20x32xf32>
    %42 = vector.extract_strided_slice %40 {offsets = [0, 32], sizes = [20, 32], strides = [1, 1]} : vector<20x96xf32> to vector<20x32xf32>
    %43 = vector.extract_strided_slice %40 {offsets = [0, 64], sizes = [20, 32], strides = [1, 1]} : vector<20x96xf32> to vector<20x32xf32>
    %c0_19 = arith.constant 0 : index
    %c0_20 = arith.constant 0 : index
    %c0_21 = arith.constant 0 : index
    %44 = vector.load %arg7[%c0_19, %c0_20, %c0_21] : memref<1x32x32xbf16, #tpu.memory_space<vmem>>, vector<1x32x32xbf16>
    %45 = vector.shape_cast %44 : vector<1x32x32xbf16> to vector<32x32xbf16>
    %cst_22 = arith.constant 0.000000e+00 : f32
    %46 = vector.broadcast %cst_22 : f32 to vector<20x32xf32>
    %47 = vector.extract_strided_slice %41 {offsets = [0, 0], sizes = [20, 16], strides = [1, 1]} : vector<20x32xf32> to vector<20x16xf32>
    %48 = arith.truncf %47 : vector<20x16xf32> to vector<20x16xbf16>
    %49 = vector.extract_strided_slice %42 {offsets = [0, 0], sizes = [20, 16], strides = [1, 1]} : vector<20x32xf32> to vector<20x16xf32>
    %50 = arith.truncf %49 : vector<20x16xf32> to vector<20x16xbf16>
    %51 = vector.extract_strided_slice %43 {offsets = [0, 0], sizes = [20, 16], strides = [1, 1]} : vector<20x32xf32> to vector<20x16xf32>
    %52 = arith.truncf %51 : vector<20x16xf32> to vector<20x16xbf16>
    %cst_23 = arith.constant dense<0.000000e+00> : vector<20x20xf32>
    %53 = tpu.matmul %48, %50, %cst_23 {dimension_numbers = #tpu.dot_dimension_numbers<[1], [1], [0], [0], [0, 0, 1, 0], [], []>} : vector<20x16xbf16>, vector<20x16xbf16>, vector<20x20xf32> -> vector<20x20xf32>
    %cst_24 = arith.constant 2.500000e-01 : f32
    %54 = vector.broadcast %cst_24 : f32 to vector<20x20xf32>
    %55 = arith.mulf %53, %54 : vector<20x20xf32>
    %cst_25 = arith.constant dense<0xFF800000> : vector<20xf32>
    %56 = vector.multi_reduction <maximumf>, %55, %cst_25 [1] : vector<20x20xf32> to vector<20xf32>
    %57 = vector.shape_cast %56 : vector<20xf32> to vector<20x1xf32>
    %58 = vector.broadcast %57 : vector<20x1xf32> to vector<20x20xf32>
    %59 = arith.subf %55, %58 : vector<20x20xf32>
    %60 = math.exp %59 : vector<20x20xf32>
    %cst_26 = arith.constant dense<0.000000e+00> : vector<20xf32>
    %61 = vector.multi_reduction <add>, %60, %cst_26 [1] : vector<20x20xf32> to vector<20xf32>
    %62 = vector.shape_cast %61 : vector<20xf32> to vector<20x1xf32>
    %63 = tpu.reciprocal %62 {approx = true} : vector<20x1xf32> -> vector<20x1xf32>
    %64 = vector.broadcast %63 : vector<20x1xf32> to vector<20x20xf32>
    %65 = arith.mulf %60, %64 : vector<20x20xf32>
    %66 = arith.truncf %65 : vector<20x20xf32> to vector<20x20xbf16>
    %cst_27 = arith.constant dense<0.000000e+00> : vector<20x16xf32>
    %67 = tpu.matmul %66, %52, %cst_27 {dimension_numbers = #tpu.dot_dimension_numbers<[1], [0], [0], [1], [0, 0, 1, 1], [], []>} : vector<20x20xbf16>, vector<20x16xbf16>, vector<20x16xf32> -> vector<20x16xf32>
    %68 = arith.truncf %67 : vector<20x16xf32> to vector<20x16xbf16>
    %69 = vector.extract_strided_slice %45 {offsets = [0, 0], sizes = [16, 32], strides = [1, 1]} : vector<32x32xbf16> to vector<16x32xbf16>
    %cst_28 = arith.constant dense<0.000000e+00> : vector<20x32xf32>
    %70 = tpu.matmul %68, %69, %cst_28 {dimension_numbers = #tpu.dot_dimension_numbers<[1], [0], [0], [1], [0, 0, 1, 1], [], []>} : vector<20x16xbf16>, vector<16x32xbf16>, vector<20x32xf32> -> vector<20x32xf32>
    %71 = arith.addf %46, %70 : vector<20x32xf32>
    %72 = vector.extract_strided_slice %41 {offsets = [0, 16], sizes = [20, 16], strides = [1, 1]} : vector<20x32xf32> to vector<20x16xf32>
    %73 = arith.truncf %72 : vector<20x16xf32> to vector<20x16xbf16>
    %74 = vector.extract_strided_slice %42 {offsets = [0, 16], sizes = [20, 16], strides = [1, 1]} : vector<20x32xf32> to vector<20x16xf32>
    %75 = arith.truncf %74 : vector<20x16xf32> to vector<20x16xbf16>
    %76 = vector.extract_strided_slice %43 {offsets = [0, 16], sizes = [20, 16], strides = [1, 1]} : vector<20x32xf32> to vector<20x16xf32>
    %77 = arith.truncf %76 : vector<20x16xf32> to vector<20x16xbf16>
    %cst_29 = arith.constant dense<0.000000e+00> : vector<20x20xf32>
    %78 = tpu.matmul %73, %75, %cst_29 {dimension_numbers = #tpu.dot_dimension_numbers<[1], [1], [0], [0], [0, 0, 1, 0], [], []>} : vector<20x16xbf16>, vector<20x16xbf16>, vector<20x20xf32> -> vector<20x20xf32>
    %cst_30 = arith.constant 2.500000e-01 : f32
    %79 = vector.broadcast %cst_30 : f32 to vector<20x20xf32>
    %80 = arith.mulf %78, %79 : vector<20x20xf32>
    %cst_31 = arith.constant dense<0xFF800000> : vector<20xf32>
    %81 = vector.multi_reduction <maximumf>, %80, %cst_31 [1] : vector<20x20xf32> to vector<20xf32>
    %82 = vector.shape_cast %81 : vector<20xf32> to vector<20x1xf32>
    %83 = vector.broadcast %82 : vector<20x1xf32> to vector<20x20xf32>
    %84 = arith.subf %80, %83 : vector<20x20xf32>
    %85 = math.exp %84 : vector<20x20xf32>
    %cst_32 = arith.constant dense<0.000000e+00> : vector<20xf32>
    %86 = vector.multi_reduction <add>, %85, %cst_32 [1] : vector<20x20xf32> to vector<20xf32>
    %87 = vector.shape_cast %86 : vector<20xf32> to vector<20x1xf32>
    %88 = tpu.reciprocal %87 {approx = true} : vector<20x1xf32> -> vector<20x1xf32>
    %89 = vector.broadcast %88 : vector<20x1xf32> to vector<20x20xf32>
    %90 = arith.mulf %85, %89 : vector<20x20xf32>
    %91 = arith.truncf %90 : vector<20x20xf32> to vector<20x20xbf16>
    %cst_33 = arith.constant dense<0.000000e+00> : vector<20x16xf32>
    %92 = tpu.matmul %91, %77, %cst_33 {dimension_numbers = #tpu.dot_dimension_numbers<[1], [0], [0], [1], [0, 0, 1, 1], [], []>} : vector<20x20xbf16>, vector<20x16xbf16>, vector<20x16xf32> -> vector<20x16xf32>
    %93 = arith.truncf %92 : vector<20x16xf32> to vector<20x16xbf16>
    %94 = vector.extract_strided_slice %45 {offsets = [16, 0], sizes = [16, 32], strides = [1, 1]} : vector<32x32xbf16> to vector<16x32xbf16>
    %cst_34 = arith.constant dense<0.000000e+00> : vector<20x32xf32>
    %95 = tpu.matmul %93, %94, %cst_34 {dimension_numbers = #tpu.dot_dimension_numbers<[1], [0], [0], [1], [0, 0, 1, 1], [], []>} : vector<20x16xbf16>, vector<16x32xbf16>, vector<20x32xf32> -> vector<20x32xf32>
    %96 = arith.addf %71, %95 : vector<20x32xf32>
    %97 = arith.addf %3, %96 : vector<20x32xf32>
    %c0_35 = arith.constant 0 : index
    %c0_36 = arith.constant 0 : index
    %c0_37 = arith.constant 0 : index
    %98 = vector.load %arg8[%c0_35, %c0_36, %c0_37] : memref<1x1x32xf32, #tpu.memory_space<vmem>>, vector<1x1x32xf32>
    %99 = vector.shape_cast %98 : vector<1x1x32xf32> to vector<32xf32>
    %100 = vector.shape_cast %99 : vector<32xf32> to vector<1x32xf32>
    %101 = vector.broadcast %100 : vector<1x32xf32> to vector<20x32xf32>
    %102 = arith.addf %97, %101 : vector<20x32xf32>
    %cst_38 = arith.constant dense<0.000000e+00> : vector<20xf32>
    %103 = vector.multi_reduction <add>, %102, %cst_38 [1] : vector<20x32xf32> to vector<20xf32>
    %104 = vector.shape_cast %103 : vector<20xf32> to vector<20x1xf32>
    %cst_39 = arith.constant 3.200000e+01 : f32
    %105 = vector.broadcast %cst_39 : f32 to vector<20x1xf32>
    %106 = arith.divf %104, %105 : vector<20x1xf32>
    %107 = vector.broadcast %106 : vector<20x1xf32> to vector<20x32xf32>
    %108 = arith.subf %102, %107 : vector<20x32xf32>
    %109 = arith.mulf %108, %108 : vector<20x32xf32>
    %cst_40 = arith.constant dense<0.000000e+00> : vector<20xf32>
    %110 = vector.multi_reduction <add>, %109, %cst_40 [1] : vector<20x32xf32> to vector<20xf32>
    %111 = vector.shape_cast %110 : vector<20xf32> to vector<20x1xf32>
    %cst_41 = arith.constant 3.200000e+01 : f32
    %112 = vector.broadcast %cst_41 : f32 to vector<20x1xf32>
    %113 = arith.divf %111, %112 : vector<20x1xf32>
    %114 = vector.broadcast %106 : vector<20x1xf32> to vector<20x32xf32>
    %115 = arith.subf %102, %114 : vector<20x32xf32>
    %cst_42 = arith.constant 9.99999974E-6 : f32
    %116 = vector.broadcast %cst_42 : f32 to vector<20x1xf32>
    %117 = arith.addf %113, %116 : vector<20x1xf32>
    %118 = math.rsqrt %117 : vector<20x1xf32>
    %119 = vector.broadcast %118 : vector<20x1xf32> to vector<20x32xf32>
    %120 = arith.mulf %115, %119 : vector<20x32xf32>
    %c0_43 = arith.constant 0 : index
    %c0_44 = arith.constant 0 : index
    %c0_45 = arith.constant 0 : index
    %121 = vector.load %arg9[%c0_43, %c0_44, %c0_45] : memref<1x1x32xf32, #tpu.memory_space<vmem>>, vector<1x1x32xf32>
    %122 = vector.shape_cast %121 : vector<1x1x32xf32> to vector<32xf32>
    %123 = vector.shape_cast %122 : vector<32xf32> to vector<1x32xf32>
    %124 = vector.broadcast %123 : vector<1x32xf32> to vector<20x32xf32>
    %125 = arith.mulf %120, %124 : vector<20x32xf32>
    %c0_46 = arith.constant 0 : index
    %c0_47 = arith.constant 0 : index
    %c0_48 = arith.constant 0 : index
    %126 = vector.load %arg10[%c0_46, %c0_47, %c0_48] : memref<1x1x32xf32, #tpu.memory_space<vmem>>, vector<1x1x32xf32>
    %127 = vector.shape_cast %126 : vector<1x1x32xf32> to vector<32xf32>
    %128 = vector.shape_cast %127 : vector<32xf32> to vector<1x32xf32>
    %129 = vector.broadcast %128 : vector<1x32xf32> to vector<20x32xf32>
    %130 = arith.addf %125, %129 : vector<20x32xf32>
    %131 = arith.truncf %130 : vector<20x32xf32> to vector<20x32xbf16>
    %c0_49 = arith.constant 0 : index
    %c0_50 = arith.constant 0 : index
    %c0_51 = arith.constant 0 : index
    %132 = vector.load %arg11[%c0_49, %c0_50, %c0_51] : memref<1x32x64xbf16, #tpu.memory_space<vmem>>, vector<1x32x64xbf16>
    %133 = vector.shape_cast %132 : vector<1x32x64xbf16> to vector<32x64xbf16>
    %cst_52 = arith.constant dense<0.000000e+00> : vector<20x64xf32>
    %134 = tpu.matmul %131, %133, %cst_52 {dimension_numbers = #tpu.dot_dimension_numbers<[1], [0], [0], [1], [0, 0, 1, 1], [], []>} : vector<20x32xbf16>, vector<32x64xbf16>, vector<20x64xf32> -> vector<20x64xf32>
    %c0_53 = arith.constant 0 : index
    %c0_54 = arith.constant 0 : index
    %c0_55 = arith.constant 0 : index
    %135 = vector.load %arg12[%c0_53, %c0_54, %c0_55] : memref<1x1x64xf32, #tpu.memory_space<vmem>>, vector<1x1x64xf32>
    %136 = vector.shape_cast %135 : vector<1x1x64xf32> to vector<64xf32>
    %137 = vector.shape_cast %136 : vector<64xf32> to vector<1x64xf32>
    %138 = vector.broadcast %137 : vector<1x64xf32> to vector<20x64xf32>
    %139 = arith.addf %134, %138 : vector<20x64xf32>
    %140 = arith.mulf %139, %139 : vector<20x64xf32>
    %141 = arith.mulf %139, %140 : vector<20x64xf32>
    %cst_56 = arith.constant 4.471500e-02 : f32
    %142 = vector.broadcast %cst_56 : f32 to vector<20x64xf32>
    %143 = arith.mulf %142, %141 : vector<20x64xf32>
    %144 = arith.addf %139, %143 : vector<20x64xf32>
    %cst_57 = arith.constant 0.797884583 : f32
    %145 = vector.broadcast %cst_57 : f32 to vector<20x64xf32>
    %146 = arith.mulf %145, %144 : vector<20x64xf32>
    %147 = math.tanh %146 : vector<20x64xf32>
    %cst_58 = arith.constant 1.000000e+00 : f32
    %148 = vector.broadcast %cst_58 : f32 to vector<20x64xf32>
    %149 = arith.addf %148, %147 : vector<20x64xf32>
    %cst_59 = arith.constant 5.000000e-01 : f32
    %150 = vector.broadcast %cst_59 : f32 to vector<20x64xf32>
    %151 = arith.mulf %150, %149 : vector<20x64xf32>
    %152 = arith.mulf %139, %151 : vector<20x64xf32>
    %153 = arith.truncf %152 : vector<20x64xf32> to vector<20x64xbf16>
    %c0_60 = arith.constant 0 : index
    %c0_61 = arith.constant 0 : index
    %c0_62 = arith.constant 0 : index
    %154 = vector.load %arg13[%c0_60, %c0_61, %c0_62] : memref<1x64x32xbf16, #tpu.memory_space<vmem>>, vector<1x64x32xbf16>
    %155 = vector.shape_cast %154 : vector<1x64x32xbf16> to vector<64x32xbf16>
    %cst_63 = arith.constant dense<0.000000e+00> : vector<20x32xf32>
    %156 = tpu.matmul %153, %155, %cst_63 {dimension_numbers = #tpu.dot_dimension_numbers<[1], [0], [0], [1], [0, 0, 1, 1], [], []>} : vector<20x64xbf16>, vector<64x32xbf16>, vector<20x32xf32> -> vector<20x32xf32>
    %c0_64 = arith.constant 0 : index
    %c0_65 = arith.constant 0 : index
    %c0_66 = arith.constant 0 : index
    %157 = vector.load %arg14[%c0_64, %c0_65, %c0_66] : memref<1x1x32xf32, #tpu.memory_space<vmem>>, vector<1x1x32xf32>
    %158 = vector.shape_cast %157 : vector<1x1x32xf32> to vector<32xf32>
    %159 = vector.shape_cast %158 : vector<32xf32> to vector<1x32xf32>
    %160 = vector.broadcast %159 : vector<1x32xf32> to vector<20x32xf32>
    %161 = arith.addf %156, %160 : vector<20x32xf32>
    %162 = arith.addf %102, %161 : vector<20x32xf32>
    %c0_67 = arith.constant 0 : index
    %c0_68 = arith.constant 0 : index
    %163 = vector.load %arg16[%c0_67, %c0_68] : memref<20x32xf32, #tpu.memory_space<vmem>>, vector<20x32xf32>
    tpu.vector_store %arg16[%c0_67, %c0_68], %162 {strides = array<i32>} : memref<20x32xf32, #tpu.memory_space<vmem>>, vector<20x32xf32>,
    %c1_i32 = arith.constant 1 : i32
    %164 = arith.cmpi eq, %arg1, %c1_i32 : i32
    %165 = arith.extui %164 : i1 to i32
    %c0_i32_69 = arith.constant 0 : i32
    %166 = arith.cmpi ne, %165, %c0_i32_69 : i32
    scf.if %166 {
      %167 = vector.extract_strided_slice %162 {offsets = [0, 0], sizes = [4, 32], strides = [1, 1]} : vector<20x32xf32> to vector<4x32xf32>
      %168 = arith.truncf %167 : vector<4x32xf32> to vector<4x32xbf16>
      %169 = vector.extract_strided_slice %162 {offsets = [4, 0], sizes = [16, 32], strides = [1, 1]} : vector<20x32xf32> to vector<16x32xf32>
      %170 = arith.truncf %169 : vector<16x32xf32> to vector<16x32xbf16>
      %cst_70 = arith.constant dense<0.000000e+00> : vector<4x16xf32>
      %171 = tpu.matmul %168, %170, %cst_70 {dimension_numbers = #tpu.dot_dimension_numbers<[1], [1], [0], [0], [0, 0, 1, 0], [], []>} : vector<4x32xbf16>, vector<16x32xbf16>, vector<4x16xf32> -> vector<4x16xf32>
      %c0_71 = arith.constant 0 : index
      %c0_72 = arith.constant 0 : index
      %c0_73 = arith.constant 0 : index
      %172 = vector.load %arg15[%c0_71, %c0_72, %c0_73] : memref<1x4x16xf32, #tpu.memory_space<vmem>>, vector<1x4x16xf32>
      %173 = vector.shape_cast %172 : vector<1x4x16xf32> to vector<4x16xf32>
      %174 = vector.shape_cast %171 : vector<4x16xf32> to vector<1x4x16xf32>
      tpu.vector_store %arg15[%c0_71, %c0_72, %c0_73], %174 {strides = array<i32>} : memref<1x4x16xf32, #tpu.memory_space<vmem>>, vector<1x4x16xf32>,
    } else {
    }
    return
  }
  func.func @transform_0(%arg0: i32, %arg1: i32) -> (i32, i32, i32) {
    %c0_i32 = arith.constant 0 : i32
    %c0_i32_0 = arith.constant 0 : i32
    %c0_i32_1 = arith.constant 0 : i32
    return %arg0, %c0_i32, %c0_i32_0 : i32, i32, i32
  }
  func.func @transform_1(%arg0: i32, %arg1: i32) -> (i32, i32, i32) {
    %c0_i32 = arith.constant 0 : i32
    %c0_i32_0 = arith.constant 0 : i32
    %c0_i32_1 = arith.constant 0 : i32
    return %arg1, %c0_i32, %c0_i32_0 : i32, i32, i32
  }
  func.func @transform_2(%arg0: i32, %arg1: i32) -> (i32, i32, i32) {
    %c0_i32 = arith.constant 0 : i32
    %c0_i32_0 = arith.constant 0 : i32
    %c0_i32_1 = arith.constant 0 : i32
    return %arg1, %c0_i32, %c0_i32_0 : i32, i32, i32
  }
  func.func @transform_3(%arg0: i32, %arg1: i32) -> (i32, i32, i32) {
    %c0_i32 = arith.constant 0 : i32
    %c0_i32_0 = arith.constant 0 : i32
    %c0_i32_1 = arith.constant 0 : i32
    return %arg1, %c0_i32, %c0_i32_0 : i32, i32, i32
  }
  func.func @transform_4(%arg0: i32, %arg1: i32) -> (i32, i32, i32) {
    %c0_i32 = arith.constant 0 : i32
    %c0_i32_0 = arith.constant 0 : i32
    %c0_i32_1 = arith.constant 0 : i32
    return %arg1, %c0_i32, %c0_i32_0 : i32, i32, i32
  }
  func.func @transform_5(%arg0: i32, %arg1: i32) -> (i32, i32, i32) {
    %c0_i32 = arith.constant 0 : i32
    %c0_i32_0 = arith.constant 0 : i32
    %c0_i32_1 = arith.constant 0 : i32
    return %arg1, %c0_i32, %c0_i32_0 : i32, i32, i32
  }
  func.func @transform_6(%arg0: i32, %arg1: i32) -> (i32, i32, i32) {
    %c0_i32 = arith.constant 0 : i32
    %c0_i32_0 = arith.constant 0 : i32
    %c0_i32_1 = arith.constant 0 : i32
    return %arg1, %c0_i32, %c0_i32_0 : i32, i32, i32
  }
  func.func @transform_7(%arg0: i32, %arg1: i32) -> (i32, i32, i32) {
    %c0_i32 = arith.constant 0 : i32
    %c0_i32_0 = arith.constant 0 : i32
    %c0_i32_1 = arith.constant 0 : i32
    return %arg1, %c0_i32, %c0_i32_0 : i32, i32, i32
  }
  func.func @transform_8(%arg0: i32, %arg1: i32) -> (i32, i32, i32) {
    %c0_i32 = arith.constant 0 : i32
    %c0_i32_0 = arith.constant 0 : i32
    %c0_i32_1 = arith.constant 0 : i32
    return %arg1, %c0_i32, %c0_i32_0 : i32, i32, i32
  }
  func.func @transform_9(%arg0: i32, %arg1: i32) -> (i32, i32, i32) {
    %c0_i32 = arith.constant 0 : i32
    %c0_i32_0 = arith.constant 0 : i32
    %c0_i32_1 = arith.constant 0 : i32
    return %arg1, %c0_i32, %c0_i32_0 : i32, i32, i32
  }
  func.func @transform_10(%arg0: i32, %arg1: i32) -> (i32, i32, i32) {
    %c0_i32 = arith.constant 0 : i32
    %c0_i32_0 = arith.constant 0 : i32
    %c0_i32_1 = arith.constant 0 : i32
    return %arg1, %c0_i32, %c0_i32_0 : i32, i32, i32
  }
  func.func @transform_11(%arg0: i32, %arg1: i32) -> (i32, i32, i32) {
    %c0_i32 = arith.constant 0 : i32
    %c0_i32_0 = arith.constant 0 : i32
    %c0_i32_1 = arith.constant 0 : i32
    return %arg1, %c0_i32, %c0_i32_0 : i32, i32, i32
  }
  func.func @transform_12(%arg0: i32, %arg1: i32) -> (i32, i32, i32) {
    %c0_i32 = arith.constant 0 : i32
    %c0_i32_0 = arith.constant 0 : i32
    %c0_i32_1 = arith.constant 0 : i32
    return %arg1, %c0_i32, %c0_i32_0 : i32, i32, i32
  }
  func.func @transform_13(%arg0: i32, %arg1: i32) -> (i32, i32, i32) {
    %c0_i32 = arith.constant 0 : i32
    %c0_i32_0 = arith.constant 0 : i32
    %c0_i32_1 = arith.constant 0 : i32
    return %arg0, %c0_i32, %c0_i32_0 : i32, i32, i32
  }
}

</mosaic_0001>

<bundles_post_ra>
// kernel: tpu_custom_call.1
= control target key start
LH: loop header
LB: loop body
LE: loop exit
PB: predicated region body
PF: predicated region fallthrough
CT: control target
= control target key end

     0   :  { %s2310_s0 = inlined_call_operand.vmem [shape: f32[2,20,32], index: 0, kind: input, shape index: {}]   ;;  %s2311_s1 = inlined_call_operand.vmem [shape: f32[2,1,32], index: 1, kind: input, shape index: {}]   ;;  %s2312_s2 = inlined_call_operand.vmem [shape: f32[2,1,32], index: 2, kind: input, shape index: {}]   ;;  %s2313_s3 = inlined_call_operand.vmem [shape: bf16[2,32,96], index: 3, kind: input, shape index: {}]   ;;  %s2314_s4 = inlined_call_operand.vmem [shape: f32[2,1,96], index: 4, kind: input, shape index: {}]   ;;  %s2315_s5 = inlined_call_operand.vmem [shape: bf16[2,32,32], index: 5, kind: input, shape index: {}]   ;;  %s2316_s6 = inlined_call_operand.vmem [shape: f32[2,1,32], index: 6, kind: input, shape index: {}]   ;;  %s2317_s7 = inlined_call_operand.vmem [shape: f32[2,1,32], index: 7, kind: input, shape index: {}]   ;;  %s2318_s8 = inlined_call_operand.vmem [shape: f32[2,1,32], index: 8, kind: input, shape index: {}]   ;;  %s2319_s9 = inlined_call_operand.vmem [shape: bf16[2,32,64], index: 9, kind: input, shape index: {}]   ;;  %s2320_s10 = inlined_call_operand.vmem [shape: f32[2,1,64], index: 10, kind: input, shape index: {}]   ;;  %s2321_s11 = inlined_call_operand.vmem [shape: bf16[2,64,32], index: 11, kind: input, shape index: {}]   ;;  %s2322_s12 = inlined_call_operand.vmem [shape: f32[2,1,32], index: 12, kind: input, shape index: {}]   ;;  %s2323_s13 = inlined_call_operand.hbm [shape: f32[2,4,16], index: 13, kind: output, shape index: {}]  }
   0x1   :  { %2339 = sst [smem:[#allocation19_spill]] %s2310_s0 }
   0x2   :  { %2340 = sst [smem:[#allocation20_spill]] %s2311_s1 }
   0x3   :  { %2341 = sst [smem:[#allocation21_spill]] %s2313_s3 }
   0x4   :  { %2342 = sst [smem:[#allocation22_spill]] %s2315_s5 }
   0x5   :  { %2343 = sst [smem:[#allocation23_spill]] %s2323_s13 }
   0x6   :  { %18 = vsyncpa [#allocation4], 0 }
   0x7   :  { %20 = vsyncpa [#allocation4 + $0x1], 0  ;;  %s1952_s25 = smov 0   ;;  %s1954_s26 = smov 0  }
   0x8   :  { %s1956_s27 = smov 0   ;;  %s1958_s28 = smov 0  }
   0x9   :  { %s1960_s29 = smov 0   ;;  %s1962_s30 = smov 0  }
   0xa   :  { %s1964_s14 = smov 0   ;;  %s1966_s15 = smov 0  }
   0xb LB: > { %2344 = sst [smem:[#allocation6_spill]] %s1846_s25  ;;  %s1554_s16 = sadd.s32 4294967295, %s1874_s15   ;;  %s1874_s15 = sphi %s1966_s15, %s26_s15   ;;  %s1870_s14 = sphi %s1964_s14, %s2385_s14   ;;  %s1866_s30 = sphi %s1962_s30, %s2384_s30   ;;  %s1862_s29 = sphi %s1960_s29, %s2383_s29   ;;  %s1858_s28 = sphi %s1958_s28, %s2382_s28   ;;  %s1854_s27 = sphi %s1956_s27, %s2381_s27   ;;  %s1850_s26 = sphi %s1954_s26, %s2380_s26   ;;  %s1846_s25 = sphi %s1952_s25, %s2379_s25  }
   0xc   : > { %2345 = sst [smem:[#allocation7_spill]] %s1850_s26  ;;  %s1555_s17 = sadd.s32 4294967294, %s1874_s15  }
   0xd   : > { %2346 = sst [smem:[#allocation8_spill]] %s1854_s27  ;;  %s35_s18 = sadd.s32 1, %s1866_s30 }
   0xe   : > { %2347 = sst [smem:[#allocation9_spill]] %s1858_s28  ;;  %p36_p0 = scmp.ge.s32.totalorder %s35_s18, 2 }
   0xf   : > { %2348 = sst [smem:[#allocation10_spill]] %s1862_s29  ;;  %s38_s19 = sadd.s32 1, %s1870_s14 }
  0x10   : > { %2349 = sst [smem:[#allocation11_spill]] %s1866_s30  ;;  %p393_p1 = scmp.ne.s32.totalorder %s1854_s27, %s1850_s26 }
  0x11   : > { %2350 = sst [smem:[#allocation12_spill]] %s1870_s14  ;;  %p394_p2 = scmp.eq.s32.totalorder %s1554_s16, 3 }
  0x12   : > { %2351 = sst [smem:[#allocation13_spill]] %s1874_s15  ;;  %s2387_s18 = smov (%p36_p0, %s35_s18), 0 }
  0x13   : > { %2352 = sst [smem:[#allocation14_spill]] %s2387_s18  ;;  %s2389_s19 = smov (!%p36_p0, %s38_s19), %s1870_s14 }
  0x14   : > { %p2001_p3 = por %p394_p2, %p393_p1  ;;  %p399_p4 = scmp.ne.s32.totalorder %s1850_s26, %s1846_s25 }
  0x15   : > { %p40_p5 = scmp.ge.s32.totalorder %s2389_s19, 2  ;;  %p400_p6 = scmp.eq.s32.totalorder %s1555_s17, 3 }
  0x16   : > { %s2353_s20 = scalar_select %p2001_p3, 1, 0 }
  0x17   : > { %p1558_p7 = scmp.ge.s32.totalorder %s1874_s15, 1  ;;  %p506_p8 = scmp.lt.s32.totalorder %s1874_s15, 5 }
  0x18   : > { %2354 = sst [smem:[#allocation15_spill]] %s2353_s20  ;;  %s2391_s19 = smov (%p40_p5, %s2389_s19), 0 }
  0x19   : > { %2355 = sst [smem:[#allocation16_spill]] %s2391_s19  ;;  %p2011_p9 = por %p400_p6, %p399_p4 }
  0x1a   : > { %p507_p10 = pnand %p1558_p7, %p506_p8  ;;  %s380_s22 = ssub.s32 %s1870_s14, %s2391_s19 }
  0x1b   : > { %s2356_s21 = scalar_select %p2011_p9, 1, 0 }
  0x1c   : > { %s383_s23 = sadd.s32 1, %s1854_s27  ;;  %p381_p11 = scmp.eq.s32.totalorder %s380_s22, 0 }
  0x1d   : > { %2357 = sst [smem:[#allocation17_spill]] %s2356_s21  ;;  %510 = sbr.rel (%p507_p10) target bundleno = 2067 (0x813), region = 72 }
  0x1e   : > { %s2019_s24 = scalar_select %p381_p11, %s1854_s27, %s383_s23  }
  0x1f   : > { %s2326_s16 = sand.u32 (!%p507_p10), 1, %s1850_s26   ;;  %p594_p12 = scmp.lt.s32.totalorder (!%p507_p10), %s1862_s29, 1 }
  0x20   : > { %2358 = sst [smem:[#allocation18_spill]] %s2019_s24  ;;  %s2025_s17 = sshll.u32 (!%p507_p10), %s2326_s16, 2 }
  0x21   : > { %p599_p13 = scmp.lt.s32.totalorder (!%p507_p10), %s1858_s28, 1  ;;  %s2360_s0 = sld [smem:[#allocation19_spill]] (!%p507_p10) }
  0x22   : > { %s595_s18 = scalar_select %p594_p12, %s1862_s29, 1 }
  0x23   : > { %s2030_s30 = scalar_select %p599_p13, %s1858_s28, 1 }
  0x24   : > { %s1650_s22 = smul.u32 24, %s595_s18  ;;  %s2361_s3 = sld [smem:[#allocation21_spill]] }
  0x25   : > { %s1634_s13 = sshll.u32 %s2030_s30, 4  ;;  %s2362_s5 = sld [smem:[#allocation22_spill]] }
  0x26   : > { %s2073_s18 = scalar_lea.vmem %s2319_s9, %s1634_s13  ;;  %s634_s19 = scalar_lea.vmem %s2320_s10, %s2030_s30 }
  0x27   : > { %s598_s15 = scalar_lea.vmem %s2360_s0, %s1650_s22  ;;  %s626_s0 = scalar_lea.vmem %s2318_s8, %s2030_s30 }
  0x28   : > { %s642_s25 = scalar_lea.vmem %s2322_s12, %s2030_s30  ;;  %s593_s26 = scalar_lea.vmem [#allocation3], %s2025_s17 }
  0x29   : > { %s2363_s20 = sld [smem:[#allocation9_spill]] }
  0x2a   : > { %s2047_s29 = scalar_lea.vmem %s2361_s3, %s1634_s13 }
  0x2b   : > { %s2056_s1 = scalar_lea.vmem %s2362_s5, %s1634_s13  ;;  %s1637_s5 = sshll.u32 %s2030_s30, 5 }
  0x2c   : > { %s2087_s27 = scalar_lea.vmem %s2321_s11, %s1637_s5 }
  0x2f   : > { %p1569_p0 = scmp.ne.s32.totalorder %s2363_s20, 0 }
  0x31   : > { %647 = sbr.rel (%p1569_p0) target bundleno = 58 (0x3a), region = 76 }
  0x36   : > { %v648_v0 = vld [vmem:[%s598_s15] sm:$0xff]  ;;  %vm651_vm0 = vcmask 261120   ;;  %v649_v1 = vld [vmem:[%s598_s15 + $0x8] sm:$0xff]  ;;  %v650_v2 = vld [vmem:[%s598_s15 + $0x10] sm:$0xf]  ;;  %vm654_vm1 = vcmask 257024  }
  0x37   : > { %652 = vst.msk [vmem:[#allocation2] sm:$0xff] %vm651_vm0, %v648_v0 }
  0x38   : > { %653 = vst.msk [vmem:[#allocation2 + $0x8] sm:$0xff] %vm651_vm0, %v649_v1 }
  0x39   : > { %655 = vst.msk [vmem:[#allocation2 + $0x10] sm:$0xf] %vm654_vm1, %v650_v2 }
  0x3a PF: > { %vm666_vm2 = vcmask 257024   ;;  %vm659_vm3 = vcmask 261120   ;;  %v1876_v9 = vmov 32.0   ;;  %v1639_v31 = vld [vmem:[%s2047_s29 + $0x8] sm:$0xff]  ;;  %v1638_v32 = vld [vmem:[%s2047_s29] sm:$0xff]  ;;  %s2364_s13 = sld [smem:[#allocation20_spill]]  ;;  %s2366_s16 = scalar_lea.vmem %s2312_s2, %s2030_s30 }
  0x3b   : > { %1736 = vrcp.f32 %v1876_v9  ;;  %1648 = vmatpush.bf16.msra.mxu2 %v1639_v31  ;;  %782 = vmatpush.bf16.msra.mxu0 %v1639_v31  ;;  %v1729_v54 = vld [vmem:[%s2366_s16] ss:$0 sm:$0xff]  ;;  %s2367_s24 = scalar_lea.vmem %s2314_s4, %s2030_s30  ;;  %s1877_s21 = smov 96   ;;  %vm806_vm14 = vcmask 130048   ;;  %vm840_vm15 = vcmask 162816   ;;  %vm847_vm0 = vcmask 158720  }
  0x3c   : > { %s1878_s22 = smov 80   ;;  %s1879_s20 = smov 112   ;;  %vm888_vm1 = vcmask 1041408  }
  0x3d   : > { %s1880_s3 = smov 64   ;;  %s1881_s5 = smov 48  }
  0x3e   : > { %v2099_v7 = vld [vmem:[#allocation2] sm:$0xff]  ;;  %s2369_s28 = scalar_lea.vmem %s2317_s7, %s2030_s30 }
  0x3f   : > { %v2093_v4 = vld [vmem:[#allocation2 + $0x8] sm:$0xff]  ;;  %v660_v8 = vsel %vm659_vm3, %v2099_v7, 0.0  ;;  %1649 = vmatpush.bf16.msra.mxu2 %v1638_v32  ;;  %783 = vmatpush.bf16.msra.mxu0 %v1638_v32 }
  0x40   : > { %v2091_v3 = vld [vmem:[#allocation2 + $0x10] sm:$0xf]  ;;  %v663_v6 = vsel %vm659_vm3, %v2093_v4, 0.0  ;;  %s2365_s29 = scalar_lea.vmem %s2364_s13, %s2030_s30 }
  0x41   : > { %v667_v5 = vsel %vm666_vm2, %v2091_v3, 0.0  ;;  %664 = vadd.xlane.f32.xlu1 %v663_v6  ;;  %v1737_v10 = vpop.eup %1736  ;;  %v1728_v50 = vld [vmem:[%s2365_s29] ss:$0 sm:$0xff]  ;;  %s2368_s29 = scalar_lea.vmem %s2316_s6, %s2030_s30  ;;  %s2370_s30 = sld [smem:[#allocation9_spill]] }
  0x42   : > { %668 = vadd.xlane.f32.xlu0 %v667_v5  ;;  %v671_v11 = vmul.f32 32.0, %v1737_v10  ;;  %vm675_vm4 = vweird.f32 %v1737_v10 }
  0x44   : > { %v672_v12 = vsub.f32 1.0, %v671_v11 }
  0x46   : > { %v673_v13 = vmul.f32 %v1737_v10, %v672_v12 }
  0x47   : > { %p1628_p1 = scmp.ne.s32.totalorder %s2370_s30, 1 }
  0x48   : > { %v674_v14 = vadd.f32 %v1737_v10, %v673_v13 }
  0x4a   : > { %661 = vadd.xlane.f32.xlu0 %v660_v8  ;;  %v2103_v15 = vsel %vm675_vm4, %v1737_v10, %v674_v14 }
  0xb4   : > { %v665_v20 = vpop.xlane.xlu1 %664 }
  0xb5   : > { %v669_v16 = vpop.xlane.xlu0 %668  ;;  %v678_v24 = vmul.f32 %v2103_v15, %v665_v20 }
  0xb6   : > { %v679_v17 = vmul.f32 %v2103_v15, %v669_v16  ;;  %v1730_v16 = vld [vmem:[%s2367_s24] ss:$0 sm:$0xff] }
  0xb7   : > { %v2112_v26 = vsub.f32 %v2093_v4, %v678_v24 }
  0xb8   : > { %v682_v18 = vsub.f32 %v2091_v3, %v679_v17 }
  0xb9   : > { %v684_v29 = vmul.f32 %v2112_v26, %v2112_v26 }
  0xba   : > { %v685_v19 = vmul.f32 %v682_v18, %v682_v18 }
  0xbb   : > { %v689_v30 = vsel %vm659_vm3, %v684_v29, 0.0 }
  0xbc   : > { %v692_v21 = vsel %vm666_vm2, %v685_v19, 0.0 }
  0xbd   : > { %693 = vadd.xlane.f32.xlu1 %v692_v21  ;;  %v662_v22 = vpop.xlane.xlu0 %661 }
  0xbe   : > { %v677_v23 = vmul.f32 %v2103_v15, %v662_v22 }
  0xc0   : > { %v680_v25 = vsub.f32 %v2099_v7, %v677_v23 }
  0xc2   : > { %v683_v27 = vmul.f32 %v680_v25, %v680_v25 }
  0xc4   : > { %v686_v28 = vsel %vm659_vm3, %v683_v27, 0.0 }
  0xc5   : > { %687 = vadd.xlane.f32.xlu2 %v686_v28 }
  0xcd   : > { %690 = vadd.xlane.f32.xlu2 %v689_v30 }
 0x130   : > { %v694_v33 = vpop.xlane.xlu1 %693 }
 0x131   : > { %v697_v34 = vmul.f32 %v694_v33, %v2103_v15 }
 0x133   : > { %v700_v35 = vadd.f32 1e-05, %v697_v34 }
 0x135   : > { %1738 = vrsqrt.f32 %v700_v35  ;;  %vm727_vm6 = vweird.f32 %v700_v35 }
 0x138   : > { %v688_v36 = vpop.xlane.xlu2 %687 }
 0x139   : > { %v695_v37 = vmul.f32 %v688_v36, %v2103_v15 }
 0x13b   : > { %v1739_v38 = vpop.eup %1738  ;;  %v698_v39 = vadd.f32 1e-05, %v695_v37 }
 0x13c   : > { %v722_v40 = vmul.f32 %v1739_v38, %v700_v35  ;;  %vm728_vm5 = vweird.f32 %v1739_v38 }
 0x13d   : > { %1740 = vrsqrt.f32 %v698_v39  ;;  %vm729_vm7 = vmor %vm727_vm6, %vm728_vm5  ;;  %vm707_vm9 = vweird.f32 %v698_v39 }
 0x13e   : > { %v723_v41 = vmul.f32 %v1739_v38, %v722_v40 }
 0x140   : > { %v724_v42 = vmul.f32 0.5, %v723_v41  ;;  %v691_v43 = vpop.xlane.xlu2 %690 }
 0x141   : > { %v696_v44 = vmul.f32 %v691_v43, %v2103_v15 }
 0x142   : > { %v725_v45 = vsub.f32 1.5, %v724_v42 }
 0x143   : > { %v1741_v46 = vpop.eup %1740  ;;  %v699_v47 = vadd.f32 1e-05, %v696_v44 }
 0x144   : > { %v726_v48 = vmul.f32 %v1739_v38, %v725_v45  ;;  %v702_v49 = vmul.f32 %v1741_v46, %v698_v39  ;;  %vm708_vm8 = vweird.f32 %v1741_v46 }
 0x145   : > { %1742 = vrsqrt.f32 %v699_v47  ;;  %vm709_vm10 = vmor %vm707_vm9, %vm708_vm8  ;;  %vm717_vm12 = vweird.f32 %v699_v47 }
 0x146   : > { %v730_v51 = vsel %vm729_vm7, %v1739_v38, %v726_v48  ;;  %v703_v52 = vmul.f32 %v1741_v46, %v702_v49 }
 0x147   : > { %v733_v53 = vmul.f32 %v730_v51, %v682_v18 }
 0x148   : > { %v704_v55 = vmul.f32 0.5, %v703_v52 }
 0x149   : > { %v740_v56 = vmul.f32 %v1728_v50, %v733_v53 }
 0x14a   : > { %v705_v57 = vsub.f32 1.5, %v704_v55 }
 0x14b   : > { %v1743_v58 = vpop.eup %1742  ;;  %v747_v59 = vadd.f32 %v1729_v54, %v740_v56 }
 0x14c   : > { %v706_v60 = vmul.f32 %v1741_v46, %v705_v57  ;;  %v712_v61 = vmul.f32 %v1743_v58, %v699_v47  ;;  %vm718_vm11 = vweird.f32 %v1743_v58 }
 0x14d   : > { %v749_v62 = vpack.c.bf16 %v747_v59, %v747_v59  ;;  %vm719_vm13 = vmor %vm717_vm12, %vm718_vm11 }
 0x14e   : > { %v713_v63 = vmul.f32 %v1743_v58, %v712_v61  ;;  %v710_v0 = vsel %vm709_vm10, %v1741_v46, %v706_v60 }
 0x14f   : > { %1579 = vmatmul.msk.bf16.vlgmr.msra.gmra.mxu2 %vm659_vm3, %v749_v62  ;;  %v731_v5 = vmul.f32 %v710_v0, %v680_v25 }
 0x150   : > { %v714_v1 = vmul.f32 0.5, %v713_v63 }
 0x151   : > { %v738_v10 = vmul.f32 %v1728_v50, %v731_v5 }
 0x152   : > { %v715_v2 = vsub.f32 1.5, %v714_v1 }
 0x153   : > { %v745_v12 = vadd.f32 %v1729_v54, %v738_v10 }
 0x154   : > { %v716_v6 = vmul.f32 %v1743_v58, %v715_v2 }
 0x156   : > { %v720_v8 = vsel %vm719_vm13, %v1743_v58, %v716_v6  ;;  %vm1283_vm13 = vcmask 523264  }
 0x157   : > { %v732_v9 = vmul.f32 %v720_v8, %v2112_v26 }
 0x159   : > { %v739_v11 = vmul.f32 %v1728_v50, %v732_v9 }
 0x15b   : > { %v746_v13 = vadd.f32 %v1729_v54, %v739_v11 }
 0x15d   : > { %v748_v14 = vpack.c.bf16 %v746_v13, %v745_v12 }
 0x15f   : > { %1578 = vmatmul.msk.bf16.vlgmr.msra.gmra.mxu0 %vm659_vm3, %v748_v14 }
 0x1d2   : > { %v790_v17 = vpop.f32.mrf.mxu2 }
 0x1d3   : > { %v791_v18 = vadd.f32 %v1730_v16, %v790_v17 }
 0x1d5   : > { %v2141_v19 = vpack.c.bf16 %v791_v18, %v791_v18 }
 0x1d7   : > { %804 = vrot.lane.b32.xlu1 %v2141_v19, %s1877_s21  ;;  %918 = vrot.lane.b32.xlu0 %v2141_v19, %s1878_s22 }
 0x1da   : > { %v792_v20 = vpop.f32.mrf.mxu2 }
 0x1dc   : > { %v785_v21 = vpop.f32.mrf.mxu0 }
 0x1dd   : > { %v786_v23 = vadd.f32 %v1730_v16, %v785_v21 }
 0x1df   : > { %914 = vrot.lane.b32.xlu1 %v2141_v19, %s1879_s20 }
 0x1e4   : > { %v787_v22 = vpop.f32.mrf.mxu0 }
 0x1e5   : > { %v788_v24 = vadd.f32 %v1730_v16, %v787_v22 }
 0x1e7   : > { %v2146_v25 = vpack.c.bf16 %v788_v24, %v786_v23 }
 0x1e9   : > { %802 = vrot.lane.b32.xlu0 %v2146_v25, %s1877_s21  ;;  %916 = vrot.lane.b32.xlu2 %v2146_v25, %s1878_s22 }
 0x1f1   : > { %912 = vrot.lane.b32.xlu2 %v2146_v25, %s1879_s20 }
 0x243   : > { %v917_v30 = vpop.permute.xlu2 %916 }
 0x244   : > { %v927_v31 = vsel %vm806_vm14, %v917_v30, 0 }
 0x249   : > { %v805_v26 = vpop.permute.xlu1 %804  ;;  %v919_v27 = vpop.permute.xlu0 %918 }
 0x24a   : > { %v817_v28 = vsel %vm806_vm14, %v805_v26, 0  ;;  %v930_v29 = vsel %vm806_vm14, %v919_v27, 0 }
 0x24b   : > { %825 = vmatpush.bf16.xpose.msra.mxu1 %v817_v28  ;;  %938 = vmatpush.bf16.xpose.msra.mxu3 %v930_v29  ;;  %v913_v32 = vpop.permute.xlu2 %912 }
 0x251   : > { %v915_v35 = vpop.permute.xlu1 %914 }
 0x253   : > { %939 = vmatpush.bf16.xpose.msra.mxu3 %v927_v31 }
 0x25a   : > { %1584 = vmatmul.msk.bf16.vlgmr.msra.gmra.mxu3 %vm806_vm14, %v913_v32 }
 0x25b   : > { %v803_v33 = vpop.permute.xlu0 %802 }
 0x25c   : > { %v814_v34 = vsel %vm806_vm14, %v803_v33, 0 }
 0x25d   : > { %826 = vmatpush.bf16.xpose.msra.mxu1 %v814_v34 }
 0x264   : > { %1580 = vmatmul.msk.bf16.vlgmr.msra.gmra.mxu1 %vm806_vm14, %v2146_v25 }
 0x26a   : > { %1585 = vmatmul.msk.bf16.gmra.mxu3 %vm806_vm14, %v915_v35 }
 0x274   : > { %1581 = vmatmul.msk.bf16.gmra.mxu1 %vm806_vm14, %v2141_v19 }
 0x2dd   : > { %v941_v36 = vpop.f32.mrf.mxu3 }
 0x2de   : > { %v950_v37 = vmul.f32 0.25, %v941_v36 }
 0x2e0   : > { %v953_v38 = vsel %vm840_vm15, %v950_v37, -inf }
 0x2e1   : > { %954 = vmax.xlane.f32.xlu1 %v953_v38  ;;  %v828_v39 = vpop.f32.mrf.mxu1 }
 0x2e2   : > { %v837_v40 = vmul.f32 0.25, %v828_v39 }
 0x2e4   : > { %v841_v41 = vsel %vm840_vm15, %v837_v40, -inf }
 0x2e5   : > { %v943_v42 = vpop.f32.mrf.mxu3  ;;  %842 = vmax.xlane.f32.xlu0 %v841_v41 }
 0x2e6   : > { %v951_v43 = vmul.f32 0.25, %v943_v42 }
 0x2e8   : > { %v956_v46 = vsel %vm840_vm15, %v951_v43, -inf }
 0x2e9   : > { %v830_v44 = vpop.f32.mrf.mxu1 }
 0x2ea   : > { %v838_v45 = vmul.f32 0.25, %v830_v44 }
 0x2ec   : > { %v844_v47 = vsel %vm840_vm15, %v838_v45, -inf }
 0x2ed   : > { %v946_v48 = vpop.f32.mrf.mxu3  ;;  %957 = vmax.xlane.f32.xlu0 %v956_v46  ;;  %845 = vmax.xlane.f32.xlu2 %v844_v47  ;;  %v1641_v46 = vld [vmem:[%s2056_s1 + $0x8] sm:$0xff] }
 0x2ee   : > { %v952_v49 = vmul.f32 0.25, %v946_v48 }
 0x2f0   : > { %v959_v50 = vsel %vm847_vm0, %v952_v49, -inf }
 0x2f1   : > { %960 = vmax.xlane.f32.xlu1 %v959_v50  ;;  %v833_v51 = vpop.f32.mrf.mxu1 }
 0x2f2   : > { %v839_v54 = vmul.f32 0.25, %v833_v51 }
 0x2f4   : > { %v848_v55 = vsel %vm847_vm0, %v839_v54, -inf }
 0x2f5   : > { %v948_v52 = vpop.f32.mrf.mxu3 }
 0x2f9   : > { %v835_v53 = vpop.f32.mrf.mxu1 }
 0x305   : > { %879 = vrot.lane.b32.xlu2 %v2141_v19, %s1880_s3 }
 0x32e   : > { %849 = vmax.xlane.f32.xlu2 %v848_v55  ;;  %v1640_v55 = vld [vmem:[%s2056_s1] sm:$0xff] }
 0x32f   : > { %1071 = vmatpush.bf16.msrb.mxu1 %v1640_v55 }
 0x354   : > { %v955_v56 = vpop.xlane.xlu1 %954 }
 0x355   : > { %v962_v57 = vsub.f32 %v950_v37, %v955_v56 }
 0x357   : > { %v965_v58 = vmul.f32 1.442695, %v962_v57 }
 0x358   : > { %v843_v59 = vpop.xlane.xlu0 %842 }
 0x359   : > { %1744 = vpow2.f32 %v965_v58  ;;  %v851_v60 = vsub.f32 %v837_v40, %v843_v59 }
 0x35b   : > { %v854_v61 = vmul.f32 1.442695, %v851_v60 }
 0x35d   : > { %1746 = vpow2.f32 %v854_v61 }
 0x35f   : > { %v1745_v62 = vpop.eup %1744 }
 0x360   : > { %v958_v63 = vpop.xlane.xlu0 %957  ;;  %v846_v0 = vpop.xlane.xlu2 %845  ;;  %v971_v1 = vsel %vm840_vm15, %v1745_v62, 0.0 }
 0x361   : > { %v963_v2 = vsub.f32 %v951_v43, %v958_v63  ;;  %v852_v5 = vsub.f32 %v838_v45, %v846_v0  ;;  %972 = vadd.xlane.f32.xlu1 %v971_v1 }
 0x363   : > { %v1747_v6 = vpop.eup %1746  ;;  %v967_v8 = vmul.f32 1.442695, %v963_v2  ;;  %v856_v9 = vmul.f32 1.442695, %v852_v5 }
 0x364   : > { %v860_v10 = vsel %vm840_vm15, %v1747_v6, 0.0  ;;  %v961_v18 = vpop.xlane.xlu1 %960 }
 0x365   : > { %1748 = vpow2.f32 %v967_v8  ;;  %861 = vadd.xlane.f32.xlu0 %v860_v10  ;;  %v964_v20 = vsub.f32 %v952_v49, %v961_v18  ;;  %v1731_v10 = vld [vmem:[%s2368_s29] ss:$0 sm:$0xff] }
 0x366   : > { %1750 = vpow2.f32 %v856_v9 }
 0x367   : > { %v969_v21 = vmul.f32 1.442695, %v964_v20 }
 0x368   : > { %v880_v11 = vpop.permute.xlu2 %879 }
 0x369   : > { %v890_v12 = vsel %vm888_vm1, %v880_v11, 0  ;;  %1752 = vpow2.f32 %v969_v21 }
 0x36a   : > { %898 = vmatpush.bf16.msrb.mxu2 %v890_v12 }
 0x36b   : > { %v1749_v13 = vpop.eup %1748 }
 0x36c   : > { %v1751_v14 = vpop.eup %1750  ;;  %v974_v16 = vsel %vm840_vm15, %v1749_v13, 0.0 }
 0x36d   : > { %975 = vadd.xlane.f32.xlu0 %v974_v16  ;;  %v863_v17 = vsel %vm840_vm15, %v1751_v14, 0.0 }
 0x36e   : > { %864 = vadd.xlane.f32.xlu2 %v863_v17 }
 0x36f   : > { %v1753_v22 = vpop.eup %1752 }
 0x370   : > { %v977_v26 = vsel %vm847_vm0, %v1753_v22, 0.0 }
 0x37a   : > { %990 = vrot.lane.b32.xlu1 %v2141_v19, %s1881_s5 }
 0x381   : > { %877 = vrot.lane.b32.xlu0 %v2146_v25, %s1880_s3 }
 0x386   : > { %988 = vrot.lane.b32.xlu2 %v2146_v25, %s1881_s5 }
 0x3a1   : > { %v850_v23 = vpop.xlane.xlu2 %849 }
 0x3a2   : > { %v853_v24 = vsub.f32 %v839_v54, %v850_v23 }
 0x3a4   : > { %v858_v27 = vmul.f32 1.442695, %v853_v24  ;;  %978 = vadd.xlane.f32.xlu1 %v977_v26 }
 0x3a6   : > { %1754 = vpow2.f32 %v858_v27 }
 0x3ac   : > { %v1755_v28 = vpop.eup %1754 }
 0x3ad   : > { %v866_v19 = vsel %vm847_vm0, %v1755_v28, 0.0 }
 0x3ae   : > { %867 = vadd.xlane.f32.xlu0 %v866_v19 }
 0x3d4   : > { %v973_v31 = vpop.xlane.xlu1 %972 }
 0x3d8   : > { %v862_v29 = vpop.xlane.xlu0 %861 }
 0x3e0   : > { %v976_v30 = vpop.xlane.xlu0 %975 }
 0x3e1   : > { %v865_v25 = vpop.xlane.xlu2 %864  ;;  %1756 = vrcp.f32 %v976_v30 }
 0x3e2   : > { %1758 = vrcp.f32 %v973_v31 }
 0x3e3   : > { %1760 = vrcp.f32 %v865_v25 }
 0x3e4   : > { %1762 = vrcp.f32 %v862_v29 }
 0x3e7   : > { %v1757_v32 = vpop.eup %1756 }
 0x3e8   : > { %v1759_v34 = vpop.eup %1758  ;;  %v984_v37 = vmul.f32 %v1757_v32, %v1749_v13 }
 0x3e9   : > { %v1761_v36 = vpop.eup %1760  ;;  %v983_v39 = vmul.f32 %v1759_v34, %v1745_v62  ;;  %v989_v41 = vpop.permute.xlu2 %988 }
 0x3ea   : > { %v1763_v38 = vpop.eup %1762  ;;  %v873_v40 = vmul.f32 %v1761_v36, %v1751_v14 }
 0x3eb   : > { %v872_v42 = vmul.f32 %v1763_v38, %v1747_v6  ;;  %v986_v44 = vpack.c.bf16 %v984_v37, %v983_v39 }
 0x3ec   : > { %v991_v33 = vpop.permute.xlu1 %990 }
 0x3ed   : > { %v1000_v35 = vsel %vm888_vm1, %v991_v33, 0  ;;  %v875_v45 = vpack.c.bf16 %v873_v40, %v872_v42 }
 0x3ee   : > { %1008 = vmatpush.bf16.msrb.mxu0 %v1000_v35 }
 0x3f2   : > { %1009 = vmatpush.bf16.msrb.mxu0 %v989_v41  ;;  %v1643_v41 = vld [vmem:[%s2073_s18 + $0x8] sm:$0xff] }
 0x3f3   : > { %v878_v43 = vpop.permute.xlu0 %877  ;;  %1206 = vmatpush.bf16.msrb.mxu3 %v1643_v41 }
 0x3f4   : > { %899 = vmatpush.bf16.msrb.mxu2 %v878_v43 }
 0x3f5   : > { %1586 = vmatmul.msk.bf16.vlgmr.msrb.gmra.mxu0 %vm840_vm15, %v986_v44  ;;  %v1642_v44 = vld [vmem:[%s2073_s18] sm:$0xff] }
 0x3f7   : > { %1582 = vmatmul.msk.bf16.vlgmr.msrb.gmra.mxu2 %vm840_vm15, %v875_v45  ;;  %1207 = vmatpush.bf16.msrb.mxu3 %v1642_v44 }
 0x3f8   : > { %1041 = vmatpush.bf16.msra.mxu2 %v1641_v46 }
 0x417   : > { %v979_v47 = vpop.xlane.xlu1 %978 }
 0x418   : > { %1764 = vrcp.f32 %v979_v47 }
 0x41e   : > { %v1765_v48 = vpop.eup %1764 }
 0x41f   : > { %v985_v49 = vmul.f32 %v1765_v48, %v1753_v22 }
 0x421   : > { %v868_v50 = vpop.xlane.xlu0 %867  ;;  %v987_v51 = vpack.c.bf16 %v985_v49, %v985_v49 }
 0x422   : > { %1766 = vrcp.f32 %v868_v50 }
 0x423   : > { %1587 = vmatmul.msk.bf16.gmra.mxu0 %vm840_vm15, %v987_v51 }
 0x428   : > { %v1767_v52 = vpop.eup %1766 }
 0x429   : > { %v874_v53 = vmul.f32 %v1767_v52, %v1755_v28 }
 0x42b   : > { %v876_v54 = vpack.c.bf16 %v874_v53, %v874_v53 }
 0x42d   : > { %1583 = vmatmul.msk.bf16.gmra.mxu2 %vm840_vm15, %v876_v54 }
 0x472   : > { %v1011_v56 = vpop.f32.mrf.mxu0 }
 0x47a   : > { %v901_v57 = vpop.f32.mrf.mxu2  ;;  %v1013_v58 = vpop.f32.mrf.mxu0 }
 0x47b   : > { %v1020_v59 = vpack.c.bf16 %v1013_v58, %v1011_v56 }
 0x47d   : > { %1592 = vmatmul.msk.bf16.vlgmr.msra.gmra.mxu2 %vm806_vm14, %v1020_v59 }
 0x482   : > { %v903_v60 = vpop.f32.mrf.mxu2 }
 0x483   : > { %v910_v61 = vpack.c.bf16 %v903_v60, %v901_v57 }
 0x485   : > { %1598 = vmatmul.msk.bf16.vlgmr.msrb.gmra.mxu1 %vm806_vm14, %v910_v61 }
 0x4a0   : > { %v1016_v62 = vpop.f32.mrf.mxu0 }
 0x4a1   : > { %v1021_v63 = vpack.c.bf16 %v1016_v62, %v1016_v62  ;;  %v1732_v62 = vld [vmem:[%s2369_s28] ss:$0 sm:$0xff] }
 0x4a3   : > { %1593 = vmatmul.msk.bf16.gmra.mxu2 %vm806_vm14, %v1021_v63 }
 0x4a8   : > { %v1018_v0 = vpop.f32.mrf.mxu0 }
 0x4b0   : > { %v906_v1 = vpop.f32.mrf.mxu2 }
 0x4b1   : > { %v911_v2 = vpack.c.bf16 %v906_v1, %v906_v1 }
 0x4b3   : > { %1599 = vmatmul.msk.bf16.gmra.mxu1 %vm806_vm14, %v911_v2 }
 0x4b8   : > { %v908_v5 = vpop.f32.mrf.mxu2 }
 0x4b9   : > { %v1733_v5 = vld [vmem:[%s626_s0] ss:$0 sm:$0xff] }
 0x500   : > { %v1043_v6 = vpop.f32.mrf.mxu2 }
 0x502   : > { %v1073_v8 = vpop.f32.mrf.mxu1 }
 0x503   : > { %v1074_v9 = vadd.f32 %v1073_v8, %v1043_v6 }
 0x505   : > { %v1082_v11 = vadd.f32 %v1074_v9, %v2099_v7 }
 0x507   : > { %v2197_v12 = vadd.f32 %v1731_v10, %v1082_v11 }
 0x508   : > { %v1045_v14 = vpop.f32.mrf.mxu2 }
 0x509   : > { %v1092_v13 = vsel %vm659_vm3, %v2197_v12, 0.0 }
 0x50a   : > { %v1075_v16 = vpop.f32.mrf.mxu1  ;;  %1093 = vadd.xlane.f32.xlu2 %v1092_v13 }
 0x50b   : > { %v1076_v17 = vadd.f32 %v1075_v16, %v1045_v14 }
 0x50d   : > { %v1083_v18 = vadd.f32 %v1076_v17, %v2093_v4 }
 0x50f   : > { %v2202_v20 = vadd.f32 %v1731_v10, %v1083_v18 }
 0x511   : > { %v1095_v21 = vsel %vm659_vm3, %v2202_v20, 0.0 }
 0x512   : > { %1096 = vadd.xlane.f32.xlu0 %v1095_v21 }
 0x526   : > { %v1048_v22 = vpop.f32.mrf.mxu2 }
 0x52e   : > { %v1050_v23 = vpop.f32.mrf.mxu2 }
 0x530   : > { %v1078_v7 = vpop.f32.mrf.mxu1 }
 0x531   : > { %v1079_v24 = vadd.f32 %v1078_v7, %v1048_v22 }
 0x533   : > { %v1084_v26 = vadd.f32 %v1079_v24, %v2091_v3 }
 0x535   : > { %v2207_v27 = vadd.f32 %v1731_v10, %v1084_v26 }
 0x537   : > { %v1098_v28 = vsel %vm666_vm2, %v2207_v27, 0.0 }
 0x538   : > { %v1080_v19 = vpop.f32.mrf.mxu1  ;;  %1099 = vadd.xlane.f32.xlu1 %v1098_v28 }
 0x539   : > { %v1647_v19 = vld [vmem:[%s2087_s27 + $0x18] sm:$0xff] }
 0x53a   : > { %1294 = vmatpush.bf16.msra.mxu0 %v1647_v19 }
 0x57d   : > { %v1094_v4 = vpop.xlane.xlu2 %1093 }
 0x57e   : > { %v1101_v29 = vmul.f32 %v1094_v4, %v2103_v15  ;;  %v1646_v4 = vld [vmem:[%s2087_s27 + $0x10] sm:$0xff] }
 0x57f   : > { %1295 = vmatpush.bf16.msra.mxu0 %v1646_v4 }
 0x580   : > { %v1104_v30 = vsub.f32 %v2197_v12, %v1101_v29  ;;  %v1645_v29 = vld [vmem:[%s2087_s27 + $0x8] sm:$0xff] }
 0x582   : > { %v1107_v31 = vmul.f32 %v1104_v30, %v1104_v30 }
 0x583   : > { %1296 = vmatpush.bf16.msra.mxu0 %v1645_v29 }
 0x584   : > { %v1110_v25 = vsel %vm659_vm3, %v1107_v31, 0.0 }
 0x585   : > { %v1097_v32 = vpop.xlane.xlu0 %1096  ;;  %1111 = vadd.xlane.f32.xlu2 %v1110_v25  ;;  %v1644_v25 = vld [vmem:[%s2087_s27] sm:$0xff] }
 0x586   : > { %v1102_v3 = vmul.f32 %v1097_v32, %v2103_v15 }
 0x587   : > { %1297 = vmatpush.bf16.msra.mxu0 %v1644_v25 }
 0x588   : > { %v1105_v33 = vsub.f32 %v2202_v20, %v1102_v3 }
 0x58a   : > { %v1108_v34 = vmul.f32 %v1105_v33, %v1105_v33 }
 0x58c   : > { %v1113_v35 = vsel %vm659_vm3, %v1108_v34, 0.0 }
 0x58d   : > { %1114 = vadd.xlane.f32.xlu0 %v1113_v35 }
 0x5ab   : > { %v1100_v36 = vpop.xlane.xlu1 %1099 }
 0x5ac   : > { %v1103_v37 = vmul.f32 %v1100_v36, %v2103_v15 }
 0x5ae   : > { %v1106_v38 = vsub.f32 %v2207_v27, %v1103_v37 }
 0x5b0   : > { %v1109_v39 = vmul.f32 %v1106_v38, %v1106_v38 }
 0x5b2   : > { %v1116_v40 = vsel %vm666_vm2, %v1109_v39, 0.0 }
 0x5b3   : > { %1117 = vadd.xlane.f32.xlu1 %v1116_v40 }
 0x5f8   : > { %v1112_v42 = vpop.xlane.xlu2 %1111 }
 0x5f9   : > { %v1119_v43 = vmul.f32 %v1112_v42, %v2103_v15 }
 0x5fb   : > { %v1122_v45 = vadd.f32 1e-05, %v1119_v43 }
 0x5fd   : > { %1768 = vrsqrt.f32 %v1122_v45  ;;  %vm1131_vm5 = vweird.f32 %v1122_v45 }
 0x600   : > { %v1115_v46 = vpop.xlane.xlu0 %1114 }
 0x601   : > { %v1120_v47 = vmul.f32 %v1115_v46, %v2103_v15 }
 0x603   : > { %v1769_v48 = vpop.eup %1768  ;;  %v1123_v49 = vadd.f32 1e-05, %v1120_v47 }
 0x604   : > { %v1126_v50 = vmul.f32 %v1769_v48, %v1122_v45  ;;  %vm1132_vm4 = vweird.f32 %v1769_v48 }
 0x605   : > { %1770 = vrsqrt.f32 %v1123_v49  ;;  %vm1133_vm6 = vmor %vm1131_vm5, %vm1132_vm4  ;;  %vm1141_vm8 = vweird.f32 %v1123_v49 }
 0x606   : > { %v1127_v51 = vmul.f32 %v1769_v48, %v1126_v50 }
 0x608   : > { %v1128_v52 = vmul.f32 0.5, %v1127_v51 }
 0x60a   : > { %v1129_v53 = vsub.f32 1.5, %v1128_v52 }
 0x60b   : > { %v1771_v54 = vpop.eup %1770 }
 0x60c   : > { %v1130_v55 = vmul.f32 %v1769_v48, %v1129_v53  ;;  %v1136_v56 = vmul.f32 %v1771_v54, %v1123_v49  ;;  %vm1142_vm7 = vweird.f32 %v1771_v54 }
 0x60d   : > { %vm1143_vm9 = vmor %vm1141_vm8, %vm1142_vm7 }
 0x60e   : > { %v1137_v57 = vmul.f32 %v1771_v54, %v1136_v56  ;;  %v1134_v58 = vsel %vm1133_vm6, %v1769_v48, %v1130_v55 }
 0x60f   : > { %v1155_v61 = vmul.f32 %v1134_v58, %v1104_v30  ;;  %v1734_v30 = vld [vmem:[%s634_s19] ss:$0 sm:$0xff] }
 0x610   : > { %v1138_v59 = vmul.f32 0.5, %v1137_v57 }
 0x611   : > { %v1162_v2 = vmul.f32 %v1732_v62, %v1155_v61 }
 0x612   : > { %v1139_v60 = vsub.f32 1.5, %v1138_v59 }
 0x613   : > { %v1169_v8 = vadd.f32 %v1733_v5, %v1162_v2  ;;  %v1735_v2 = vld [vmem:[%s642_s25] ss:$0 sm:$0xff] }
 0x614   : > { %v1140_v63 = vmul.f32 %v1771_v54, %v1139_v60 }
 0x616   : > { %v1144_v0 = vsel %vm1143_vm9, %v1771_v54, %v1140_v63 }
 0x617   : > { %v1156_v1 = vmul.f32 %v1144_v0, %v1105_v33 }
 0x619   : > { %v1163_v6 = vmul.f32 %v1732_v62, %v1156_v1 }
 0x61b   : > { %v1170_v9 = vadd.f32 %v1733_v5, %v1163_v6 }
 0x61d   : > { %v1172_v10 = vpack.c.bf16 %v1170_v9, %v1169_v8 }
 0x61f   : > { %1608 = vmatmul.msk.bf16.vlgmr.msrb.gmra.mxu3 %vm659_vm3, %v1172_v10 }
 0x626   : > { %v1118_v11 = vpop.xlane.xlu1 %1117 }
 0x627   : > { %v1121_v13 = vmul.f32 %v1118_v11, %v2103_v15 }
 0x629   : > { %v1124_v14 = vadd.f32 1e-05, %v1121_v13 }
 0x62b   : > { %1772 = vrsqrt.f32 %v1124_v14  ;;  %vm1151_vm11 = vweird.f32 %v1124_v14 }
 0x631   : > { %v1773_v16 = vpop.eup %1772 }
 0x632   : > { %v1146_v17 = vmul.f32 %v1773_v16, %v1124_v14  ;;  %vm1152_vm10 = vweird.f32 %v1773_v16 }
 0x633   : > { %vm1153_vm12 = vmor %vm1151_vm11, %vm1152_vm10 }
 0x634   : > { %v1147_v18 = vmul.f32 %v1773_v16, %v1146_v17 }
 0x636   : > { %v1148_v21 = vmul.f32 0.5, %v1147_v18 }
 0x638   : > { %v1149_v22 = vsub.f32 1.5, %v1148_v21 }
 0x63a   : > { %v1150_v23 = vmul.f32 %v1773_v16, %v1149_v22 }
 0x63c   : > { %v1154_v7 = vsel %vm1153_vm12, %v1773_v16, %v1150_v23 }
 0x63d   : > { %v1157_v24 = vmul.f32 %v1154_v7, %v1106_v38 }
 0x63f   : > { %v1164_v26 = vmul.f32 %v1732_v62, %v1157_v24 }
 0x641   : > { %v1171_v15 = vadd.f32 %v1733_v5, %v1164_v26 }
 0x643   : > { %v1173_v28 = vpack.c.bf16 %v1171_v15, %v1171_v15 }
 0x645   : > { %1609 = vmatmul.msk.bf16.gmra.mxu3 %vm659_vm3, %v1173_v28 }
 0x6a2   : > { %v1209_v31 = vpop.f32.mrf.mxu3 }
 0x6a3   : > { %v1210_v32 = vadd.f32 %v1734_v30, %v1209_v31 }
 0x6a5   : > { %v1218_v3 = vmul.f32 %v1210_v32, %v1210_v32 }
 0x6a7   : > { %v1221_v33 = vmul.f32 %v1218_v3, %v1210_v32 }
 0x6a9   : > { %v1224_v34 = vmul.f32 0.044715, %v1221_v33 }
 0x6aa   : > { %v1211_v35 = vpop.f32.mrf.mxu3 }
 0x6ab   : > { %v1227_v36 = vadd.f32 %v1224_v34, %v1210_v32  ;;  %v1212_v37 = vadd.f32 %v1734_v30, %v1211_v35 }
 0x6ad   : > { %v1230_v38 = vmul.f32 0.7978846, %v1227_v36  ;;  %v1219_v39 = vmul.f32 %v1212_v37, %v1212_v37 }
 0x6af   : > { %v1222_v40 = vmul.f32 %v1219_v39, %v1212_v37  ;;  %1774 = vtanh.f32 %v1230_v38 }
 0x6b1   : > { %v1225_v41 = vmul.f32 0.044715, %v1222_v40 }
 0x6b3   : > { %v1228_v42 = vadd.f32 %v1225_v41, %v1212_v37 }
 0x6b5   : > { %v1231_v43 = vmul.f32 0.7978846, %v1228_v42  ;;  %v1775_v44 = vpop.eup %1774 }
 0x6b6   : > { %v1236_v45 = vadd.f32 1.0, %v1775_v44 }
 0x6b7   : > { %1776 = vtanh.f32 %v1231_v43 }
 0x6b8   : > { %v1239_v47 = vmul.f32 0.5, %v1236_v45 }
 0x6ba   : > { %v1242_v50 = vmul.f32 %v1239_v47, %v1210_v32 }
 0x6bd   : > { %v1777_v46 = vpop.eup %1776 }
 0x6be   : > { %v1237_v48 = vadd.f32 1.0, %v1777_v46 }
 0x6c0   : > { %v1240_v49 = vmul.f32 0.5, %v1237_v48 }
 0x6c2   : > { %v1243_v51 = vmul.f32 %v1240_v49, %v1212_v37 }
 0x6c4   : > { %v1245_v52 = vpack.c.bf16 %v1243_v51, %v1242_v50 }
 0x6c6   : > { %1626 = vmatmul.msk.bf16.vlgmr.msra.gmra.mxu0 %vm1283_vm13, %v1245_v52 }
 0x6c8   : > { %v1214_v53 = vpop.f32.mrf.mxu3 }
 0x6c9   : > { %v1215_v54 = vadd.f32 %v1734_v30, %v1214_v53 }
 0x6cb   : > { %v1220_v55 = vmul.f32 %v1215_v54, %v1215_v54 }
 0x6cd   : > { %v1223_v56 = vmul.f32 %v1220_v55, %v1215_v54 }
 0x6cf   : > { %v1226_v57 = vmul.f32 0.044715, %v1223_v56 }
 0x6d0   : > { %v1216_v58 = vpop.f32.mrf.mxu3 }
 0x6d1   : > { %v1229_v59 = vadd.f32 %v1226_v57, %v1215_v54 }
 0x6d3   : > { %v1232_v60 = vmul.f32 0.7978846, %v1229_v59 }
 0x6d5   : > { %1778 = vtanh.f32 %v1232_v60 }
 0x6db   : > { %v1779_v61 = vpop.eup %1778 }
 0x6dc   : > { %v1238_v62 = vadd.f32 1.0, %v1779_v61 }
 0x6de   : > { %v1241_v63 = vmul.f32 0.5, %v1238_v62 }
 0x6e0   : > { %v1244_v0 = vmul.f32 %v1241_v63, %v1215_v54 }
 0x6e2   : > { %v1246_v1 = vpack.c.bf16 %v1244_v0, %v1244_v0 }
 0x6e4   : > { %1627 = vmatmul.msk.bf16.gmra.mxu0 %vm1283_vm13, %v1246_v1 }
 0x743   : > { %v1299_v5 = vpop.f32.mrf.mxu0 }
 0x744   : > { %v1300_v6 = vadd.f32 %v1735_v2, %v1299_v5 }
 0x746   : > { %v1308_v8 = vadd.f32 %v1300_v6, %v2197_v12 }
 0x748   : > { %1311 = vst.msk [vmem:[#allocation2] sm:$0xff] %vm659_vm3, %v1308_v8 }
 0x74b   : > { %v1301_v9 = vpop.f32.mrf.mxu0 }
 0x74c   : > { %v1302_v10 = vadd.f32 %v1735_v2, %v1301_v9 }
 0x74e   : > { %v1309_v11 = vadd.f32 %v1302_v10, %v2202_v20 }
 0x750   : > { %1312 = vst.msk [vmem:[#allocation2 + $0x8] sm:$0xff] %vm659_vm3, %v1309_v11 }
 0x761   : > { %v1304_v13 = vpop.f32.mrf.mxu0 }
 0x762   : > { %v1305_v14 = vadd.f32 %v1735_v2, %v1304_v13 }
 0x764   : > { %v1310_v16 = vadd.f32 %v1305_v14, %v2207_v27 }
 0x765   : > { %1317 = sbr.rel (%p1628_p1) target bundleno = 2045 (0x7fd), region = 80 }
 0x766   : > { %1313 = vst.msk [vmem:[#allocation2 + $0x10] sm:$0xf] %vm666_vm2, %v1310_v16 }
 0x769   : > { %v1306_v17 = vpop.f32.mrf.mxu0 }
 0x76a   : > { %v1319_v18 = vpack.c.bf16 %v1309_v11, %v1308_v8  ;;  %v1320_v12 = vpack.c.bf16 %v1310_v16, %v1310_v16  ;;  %vm1323_vm14 = vcmask 1045504   ;;  %v1318_v7 = vpack.c.bf16 %v1308_v8, %v1308_v8 }
 0x76b   : > { %vm1346_vm15 = vcmask 125952  }
 0x76c   : > { %v1324_v21 = vrot.slane %v1319_v18, 2  ;;  %v1325_v22 = vrot.slane %v1320_v12, 2 }
 0x76e   : > { %v1326_v23 = vsel %vm1323_vm14, %v1324_v21, %v1325_v22 }
 0x76f   : > { %v1331_v20 = vsel %vm659_vm3, %v1326_v23, 0 }
 0x770   : > { %1340 = vmatpush.bf16.xpose.msra.mxu0 %v1331_v20 }
 0x777   : > { %1629 = vmatmul.msk.bf16.vlgmr.msra.gmra.mxu0 %vm659_vm3, %v1318_v7 }
 0x7f4   : > { %v1342_v27 = vpop.f32.mrf.mxu0 }
 0x7f5   : > { %1347 = vst.msk [vmem:[%s593_s26] sm:$0xf] %vm1346_vm15, %v1342_v27 }
 0x7fc   : > { %v1344_v24 = vpop.f32.mrf.mxu0 }
 0x7fd PF: > { %s2371_s25 = sld [smem:[#allocation10_spill]]  ;;  %s1361_s13 = sshll.u32 %s593_s26, 4  ;;  %s1362_s13 = int_to_ptr.vmem [resolvable:$true] %s1361_s13 }
 0x7fe   : > { %s2372_s24 = sld [smem:[#allocation7_spill]] }
 0x7ff   : > { %s2374_s5 = sld [smem:[#allocation23_spill]] }
 0x803   : > { %s1631_s22 = sshll.u32 %s2371_s25, 2 }
 0x804   : > { %s2375_s18 = sand.u32 1, %s2372_s24  }
 0x805   : > { %s1359_s1 = scalar_lea.hbm %s2374_s5, %s1631_s22  ;;  %s1349_s15 = scalar_lea.sflag [#allocation4], %s2375_s18 }
 0x806   : > { %s1363_s29 = sshll.u32 %s1359_s1, 4  ;;  %s1800_s14 = scalar_lea.hbm %s2374_s5, 8  ;;  %s1364_s29 = int_to_ptr.hbm [resolvable:$true] %s1363_s29 }
 0x807   : > { %s1794_s28 = sshra.s32 %s1364_s29, 4  ;;  %s1795_s28 = int_to_ptr.hbm [resolvable:$true] %s1794_s28 }
 0x808   : > { %s1796_s16 = scalar_lea.hbm %s1795_s28, 4  ;;  %p1801_p6 = scmp.lt.s32.totalorder %s1795_s28, %s2374_s5 }
 0x809   : > { %p1797_p2 = scmp.ne.s32.totalorder %s1795_s28, %s1796_s16  ;;  %p1802_p7 = scmp.lt.s32.totalorder %s1800_s14, %s1796_s16 }
 0x80b   : > { %p1798_p4 = pnand %p1797_p2, %p2001_p3  ;;  %p1803_p8 = por %p1802_p7, %p1801_p6 }
 0x80d   : > { %p1799_p5 = pneg %p1798_p4 }
 0x80f   : > { %p1804_p10 = pnand %p1803_p8, %p1799_p5 }
 0x811   : > { %1807 = shalt.err (!%p1804_p10)
}
 0x812   : > { %1651 = dma.vmem_to_hbm [thread:$0]  (%p2001_p3), %s1362_s13, 64, %s1364_s29, %s1349_s15  }
 0x813 PF: > { %s2376_s17 = sld [smem:[#allocation13_spill]] }
 0x814   : > { %s2377_s26 = sld [smem:[#allocation6_spill]] }
 0x819   : > { %p1657_p11 = scmp.ge.s32.totalorder %s2376_s17, 2 }
 0x81a   : > { %s1375_s25 = sand.u32 1, %s2377_s26  }
 0x81b   : > { %p1654_p12 = pnand %p1657_p11, %p2011_p9  ;;  %s1376_s24 = scalar_lea.sflag [#allocation4], %s1375_s25 }
 0x81d   : > { %p1655_p13 = pneg %p1654_p12 }
 0x81f   : > { %1841 = dma.done.wait (%p1655_p13), %s1376_s24, 64  }
 0x820   : > { %1843 = vsyncadd (%p1655_p13), %s1376_s24, 4294967232  ;;  %s26_s15 = sadd.s32 1, %s2376_s17   ;;  %s2379_s25 = sld [smem:[#allocation7_spill]] }
 0x821   : > { %p23_p0 = scmp.ge.s32.totalorder %s26_s15, 6   ;;  %s2380_s26 = sld [smem:[#allocation8_spill]] }
 0x822   : > { %s2381_s27 = sld [smem:[#allocation18_spill]] }
 0x823   : > { %s2382_s28 = sld [smem:[#allocation11_spill]]  ;;  %25 = sbr.rel (!%p23_p0) target bundleno = 11 (0xb), region = 151 }
 0x824   : > { %s2383_s29 = sld [smem:[#allocation12_spill]] }
 0x825   : > { %s2384_s30 = sld [smem:[#allocation14_spill]] }
 0x826   : > { %s2385_s14 = sld [smem:[#allocation16_spill]] }
 0x828   :  { %1382 = vsyncpa [#allocation4], 1 }
 0x829   :  { %1384 = vsyncpa [#allocation4 + $0x1], 1 }

</bundles_post_ra>
